<compile_context>
chip_gen: v6e
topology: v6e:2x2x1
jax: 0.10.0
libtpu: 0.0.40
codegen_flags: <defaults>
</compile_context>

<pallas_src>
import functools

import jax
import jax.numpy as jnp
import numpy as np
from jax.experimental import pallas as pl
from jax.experimental.pallas import tpu as pltpu

D_MODEL = 32
NHEAD = 4
DIM_FF = 64
EPS = 1e-5          # nn.LayerNorm default
LANE = 128          # lane tile width used for slab / projection alignment
NEG_INF = -1e30


# ---------------------------------------------------------------------------
# packed-parameter layouts (shared by the offline packer and the kernel)
# ---------------------------------------------------------------------------
def _wide_layout(E):
    # fused projection weights; each logical sub-block sits on a 128-lane boundary
    entries = [("sa_wqkv", E, 3 * LANE), ("ca_wkv", E, 2 * LANE), ("ca_wq", E, LANE)]
    layout, row = {}, 0
    for name, nr, nc in entries:
        layout[name] = (row, nr, nc)
        row += nr
    return layout, row, 3 * LANE


def _mat_layout(E, F, w_sa, w_ca, nq):
    # small square weights + precomputed static masks, all <= 128 lanes wide
    entries = [
        ("sa_wo", E, E), ("ca_wo", E, E), ("w1", E, F), ("w2", F, E),
        ("hmask_sa", w_sa, LANE), ("hmask_ca", w_ca, LANE),
        ("bmask_sa", nq, w_sa), ("bmask_ca", nq, w_ca),
    ]
    layout, row = {}, 0
    for name, nr, nc in entries:
        assert nc <= LANE and row % 8 == 0
        layout[name] = (row, nr, nc)
        row += nr
    return layout, row


def _vec_layout(E, F):
    entries = [
        ("sa_bqkv", 3 * LANE), ("ca_bkv", 2 * LANE), ("ca_bq", LANE),
        ("sa_bo", E), ("ca_bo", E), ("b1", F), ("b2", E),
        ("g1", E), ("be1", E), ("g2", E), ("be2", E), ("g3", E), ("be3", E),
    ]
    layout = {name: (i, w) for i, (name, w) in enumerate(entries)}
    return layout, len(entries), 3 * LANE


# ---------------------------------------------------------------------------
# offline mask construction (numpy; no runtime XLA ops)
# ---------------------------------------------------------------------------
def _head_mask(w, nk, E, hd):
    """(w, 128): lanes 0:E hold the head indicator (1 iff row's head == lane's head),
    lanes E:128 hold ones.  Because the k/v projections are zero in lanes E:128, this
    single matrix masks k_wide/v_wide AND acts as the per-head softmax-denominator
    summation matrix (pad lanes give a positive, finite, unused denominator)."""
    m = np.ones((w, LANE), np.float32)
    rh = (np.arange(w) // nk)[:, None]
    ch = (np.arange(E) // hd)[None, :]
    m[:, :E] = (rh == ch).astype(np.float32)
    return m


def _batch_mask(nq, pq, nk, pk, nhead):
    """(nq, nhead*nk) additive mask: 0 where query row and key column belong to the
    same folded batch element, -1e30 otherwise."""
    qb = (np.arange(nq) // pq)[:, None]
    kb = ((np.arange(nhead * nk) % nk) // pk)[None, :]
    return np.where(qb == kb, 0.0, NEG_INF).astype(np.float32)


# ---------------------------------------------------------------------------
# one-time parameter packing (pure numpy -> zero per-call XLA ops)
# ---------------------------------------------------------------------------
def pack_params(params, *, batch, pq, pk, nhead=NHEAD):
    p = {k: np.asarray(v, np.float32) for k, v in params.items()}
    E = p["sa_wq"].shape[0]
    F = p["w1"].shape[1]
    hd = E // nhead
    scale = np.float32(hd ** -0.5)          # folded into Wq / bq (self + cross)
    nq, nk_sa, nk_ca = batch * pq, batch * pq, batch * pk
    w_sa, w_ca = nhead * nk_sa, nhead * nk_ca

    # fused projection weights, lane-aligned sub-blocks
    wide_l, wr, wc = _wide_layout(E)
    wide = np.zeros((wr, wc), np.float32)

    def put_wide(name, blocks):
        r0, nr, _ = wide_l[name]
        for j, blk in enumerate(blocks):
            wide[r0:r0 + nr, j * LANE:j * LANE + blk.shape[1]] = blk

    put_wide("sa_wqkv", [p["sa_wq"] * scale, p["sa_wk"], p["sa_wv"]])
    put_wide("ca_wkv", [p["ca_wk"], p["ca_wv"]])
    put_wide("ca_wq", [p["ca_wq"] * scale])

    # small weights + static masks
    mat_l, mr = _mat_layout(E, F, w_sa, w_ca, nq)
    mat = np.zeros((mr, LANE), np.float32)
    blocks = {
        "sa_wo": p["sa_wo"], "ca_wo": p["ca_wo"], "w1": p["w1"], "w2": p["w2"],
        "hmask_sa": _head_mask(w_sa, nk_sa, E, hd),
        "hmask_ca": _head_mask(w_ca, nk_ca, E, hd),
        "bmask_sa": _batch_mask(nq, pq, nk_sa, pq, nhead),
        "bmask_ca": _batch_mask(nq, pq, nk_ca, pk, nhead),
    }
    for name, arr in blocks.items():
        r0, nr, nc = mat_l[name]
        assert arr.shape == (nr, nc), (name, arr.shape, (nr, nc))
        mat[r0:r0 + nr, 0:nc] = arr

    # biases (lane-aligned to match the fused projections) + LayerNorm params
    vec_l, vr, vc = _vec_layout(E, F)
    vec = np.zeros((vr, vc), np.float32)

    def put_vec(name, blocks):
        r, _ = vec_l[name]
        for j, blk in enumerate(blocks):
            vec[r, j * LANE:j * LANE + blk.shape[-1]] = blk.reshape(-1)

    put_vec("sa_bqkv", [p["sa_bq"] * scale, p["sa_bk"], p["sa_bv"]])
    put_vec("ca_bkv", [p["ca_bk"], p["ca_bv"]])
    put_vec("ca_bq", [p["ca_bq"] * scale])
    for name in ("sa_bo", "ca_bo", "b1", "b2", "g1", "be1", "g2", "be2", "g3", "be3"):
        put_vec(name, [p[name]])

    return wide, mat, vec


# ---------------------------------------------------------------------------
# in-kernel helpers
# ---------------------------------------------------------------------------
def _layernorm(x, gamma, beta):
    mu = jnp.mean(x, axis=-1, keepdims=True)
    var = jnp.mean(jnp.square(x - mu), axis=-1, keepdims=True)
    return (x - mu) * jax.lax.rsqrt(var + EPS) * gamma + beta


def _wide_mha(q, k, v, head_mask, bmask, wo, bo, *, nhead):
    """All heads and all folded batch elements in one pair of wide MXU pushes.

    q/k/v: (rows, 128) lane-padded (data in lanes 0:E, zeros elsewhere).
    head_mask: (nhead*nk, 128) precomputed indicator (ones in the pad lanes) used for
               k_wide/v_wide masking AND as the softmax-denominator summation matrix.
    bmask:     (nq, nhead*nk) precomputed additive folded-batch isolation mask.
    """
    e = wo.shape[0]
    k_wide = head_mask * jnp.concatenate([k] * nhead, axis=0)
    v_wide = head_mask * jnp.concatenate([v] * nhead, axis=0)

    # scores: contract the (zero-padded) feature lanes; the transposed RHS goes straight
    # to the MXU (no explicit k transpose or lane concatenation on the latency chain).
    s = jax.lax.dot_general(q, k_wide, (((1,), (1,)), ((), ())),
                            preferred_element_type=jnp.float32)
    s = s + bmask
    # per-row global max is a valid stabilizer for every head block of that row;
    # masked entries underflow to exactly 0.
    p = jnp.exp(s - jnp.max(s, axis=-1, keepdims=True))

    pv = jnp.dot(p, v_wide, preferred_element_type=jnp.float32)        # (nq, 128)
    den = jnp.dot(p, head_mask, preferred_element_type=jnp.float32)    # (nq, 128)
    o = (pv * pl.reciprocal(den, approx=True))[:, 0:e]                 # lane-0 slice: free
    return jnp.dot(o, wo, preferred_element_type=jnp.float32) + bo


# ---------------------------------------------------------------------------
# fused decoder-layer kernel (single invocation, whole layer, no grid)
# ---------------------------------------------------------------------------
def _decoder_layer_kernel(q_ref, kv_ref, wide_ref, mat_ref, vec_ref, out_ref,
                          *, nhead, nbatch, pq, pk, dim_ff):
    E = q_ref.shape[1]
    F = dim_ff
    nq = nbatch * pq
    w_sa = nhead * nbatch * pq
    w_ca = nhead * nbatch * pk

    wide_l, _, _ = _wide_layout(E)
    mat_l, _ = _mat_layout(E, F, w_sa, w_ca, nq)
    vec_l, _, _ = _vec_layout(E, F)

    def wide(name):
        r0, nr, nc = wide_l[name]
        return wide_ref[r0:r0 + nr, 0:nc]

    def mat(name):
        r0, nr, nc = mat_l[name]
        return mat_ref[r0:r0 + nr, 0:nc]

    def vec(name):
        r, nc = vec_l[name]
        return vec_ref[r:r + 1, 0:nc]

    # fold (B, E, P) -> (B*P, E) in-kernel (small XLU transposes; replaces the
    # wrapper-side transpose/reshape XLA ops).
    x = jnp.concatenate([q_ref[b].T for b in range(nbatch)], axis=0)      # (B*Pq, E)
    mem = jnp.concatenate([kv_ref[b].T for b in range(nbatch)], axis=0)   # (B*Pk, E)

    # ----- self-attention: fused, lane-aligned QKV projection (q-scale pre-folded) -----
    qkv = jnp.dot(x, wide("sa_wqkv"), preferred_element_type=jnp.float32) + vec("sa_bqkv")
    attn = _wide_mha(qkv[:, 0:LANE], qkv[:, LANE:2 * LANE], qkv[:, 2 * LANE:3 * LANE],
                     mat("hmask_sa"), mat("bmask_sa"), mat("sa_wo"), vec("sa_bo"),
                     nhead=nhead)
    x = _layernorm(x + attn, vec("g1"), vec("be1"))

    # ----- cross-attention: fused, lane-aligned KV projection -----
    qc = jnp.dot(x, wide("ca_wq"), preferred_element_type=jnp.float32) + vec("ca_bq")
    kvc = jnp.dot(mem, wide("ca_wkv"), preferred_element_type=jnp.float32) + vec("ca_bkv")
    attn = _wide_mha(qc, kvc[:, 0:LANE], kvc[:, LANE:2 * LANE],
                     mat("hmask_ca"), mat("bmask_ca"), mat("ca_wo"), vec("ca_bo"),
                     nhead=nhead)
    x = _layernorm(x + attn, vec("g2"), vec("be2"))

    # ----- feed-forward (relu) -----
    h = jnp.maximum(jnp.dot(x, mat("w1"), preferred_element_type=jnp.float32) + vec("b1"), 0.0)
    f = jnp.dot(h, mat("w2"), preferred_element_type=jnp.float32) + vec("b2")
    x = _layernorm(x + f, vec("g3"), vec("be3"))

    # unfold (B*Pq, E) -> (B, E, Pq): write the module's native output layout directly.
    xt = x.T                                                              # (E, B*Pq)
    for b in range(nbatch):
        out_ref[b] = xt[:, b * pq:(b + 1) * pq]


# ---------------------------------------------------------------------------
# factory: pack once, return a jitted forward with a single fused pallas_call
# ---------------------------------------------------------------------------
def make_decoder_layer(params, *, batch, pq, pk, nhead=NHEAD, dim_ff=DIM_FF):
    E = int(np.asarray(params["sa_wq"]).shape[0])
    F = int(np.asarray(params["w1"]).shape[1])
    assert F == dim_ff

    wide_np, mat_np, vec_np = pack_params(params, batch=batch, pq=pq, pk=pk, nhead=nhead)
    wide, mat, vec = jnp.asarray(wide_np), jnp.asarray(mat_np), jnp.asarray(vec_np)

    nq, nk_ca = batch * pq, batch * pk
    w_sa, w_ca = nhead * batch * pq, nhead * batch * pk
    mm = lambda m, k, n: 2 * m * k * n
    flops = (mm(nq, E, 3 * LANE) + mm(nq, LANE, w_sa) + 2 * mm(nq, w_sa, LANE) + mm(nq, E, E)
             + mm(nq, E, LANE) + mm(nk_ca, E, 2 * LANE) + mm(nq, LANE, w_ca)
             + 2 * mm(nq, w_ca, LANE) + mm(nq, E, E) + mm(nq, E, F) + mm(nq, F, E))
    transcendentals = nq * (w_sa + w_ca) + 2 * nq * LANE + 3 * nq
    bytes_accessed = 4 * (batch * E * (pq + pk) + wide.size + mat.size + vec.size
                          + batch * E * pq)

    kernel = functools.partial(_decoder_layer_kernel, nhead=nhead, nbatch=batch,
                               pq=pq, pk=pk, dim_ff=dim_ff)

    call = pl.pallas_call(
        kernel,
        out_shape=jax.ShapeDtypeStruct((batch, E, pq), jnp.float32),
        in_specs=[pl.BlockSpec((batch, E, pq), lambda: (0, 0, 0)),
                  pl.BlockSpec((batch, E, pk), lambda: (0, 0, 0)),
                  pl.BlockSpec(wide.shape, lambda: (0, 0)),
                  pl.BlockSpec(mat.shape, lambda: (0, 0)),
                  pl.BlockSpec(vec.shape, lambda: (0, 0))],
        out_specs=pl.BlockSpec((batch, E, pq), lambda: (0, 0, 0)),
        cost_estimate=pl.CostEstimate(flops=int(flops),
                                      transcendentals=int(transcendentals),
                                      bytes_accessed=int(bytes_accessed)),
        compiler_params=pltpu.CompilerParams(),   # no grid -> no dimension semantics needed
    )

    @jax.jit
    def forward(query, key, query_pos=None, key_pos=None):
        # query: (B, C, Pq), key: (B, C, Pk); pos embeds unused (posembed modules = None).
        del query_pos, key_pos
        return call(query.astype(jnp.float32), key.astype(jnp.float32), wide, mat, vec)

    return forward


# ---------------------------------------------------------------------------
# pure-JAX reference (straightforward per-batch / per-head math) for verification
# ---------------------------------------------------------------------------
def _mha_ref(q_in, kv_in, wq, wk, wv, bq, bk, bv, wo, bo, nhead):
    e = q_in.shape[-1]
    hd = e // nhead
    q = (jnp.dot(q_in, wq) + bq) * (hd ** -0.5)
    k = jnp.dot(kv_in, wk) + bk
    v = jnp.dot(kv_in, wv) + bv
    outs = []
    for h in range(nhead):
        qh = q[:, h * hd:(h + 1) * hd]
        kh = k[:, h * hd:(h + 1) * hd]
        vh = v[:, h * hd:(h + 1) * hd]
        s = jnp.dot(qh, kh.T)
        s = s - jnp.max(s, axis=-1, keepdims=True)
        p = jnp.exp(s)
        p = p / jnp.sum(p, axis=-1, keepdims=True)
        outs.append(jnp.dot(p, vh))
    return jnp.dot(jnp.concatenate(outs, axis=-1), wo) + bo


def reference(query, key, params, nhead=NHEAD):
    q = jnp.transpose(query, (0, 2, 1)).astype(jnp.float32)
    kv = jnp.transpose(key, (0, 2, 1)).astype(jnp.float32)
    p = params

    def per_batch(xb, kvb):
        x = xb
        sa = _mha_ref(x, x, p["sa_wq"], p["sa_wk"], p["sa_wv"],
                      p["sa_bq"], p["sa_bk"], p["sa_bv"], p["sa_wo"], p["sa_bo"], nhead)
        x = _layernorm(x + sa, p["g1"], p["be1"])
        ca = _mha_ref(x, kvb, p["ca_wq"], p["ca_wk"], p["ca_wv"],
                      p["ca_bq"], p["ca_bk"], p["ca_bv"], p["ca_wo"], p["ca_bo"], nhead)
        x = _layernorm(x + ca, p["g2"], p["be2"])
        h = jnp.maximum(jnp.dot(x, p["w1"]) + p["b1"], 0.0)
        f = jnp.dot(h, p["w2"]) + p["b2"]
        return _layernorm(x + f, p["g3"], p["be3"])

    out = jax.vmap(per_batch)(q, kv)
    return jnp.transpose(out, (0, 2, 1))


# ---------------------------------------------------------------------------
# deterministic parameter init (shapes follow the PyTorch module; weights stored
# pre-transposed so the math is x @ W + b)
# ---------------------------------------------------------------------------
def init_params(key):
    ks = jax.random.split(key, 32)
    E, F = D_MODEL, DIM_FF

    def w(i, shape, scale=0.1):
        return (scale * jax.random.normal(ks[i], shape)).astype(jnp.float32)

    p = {}
    i = 0
    for pfx in ("sa", "ca"):
        for nm in ("wq", "wk", "wv", "wo"):
            p[f"{pfx}_{nm}"] = w(i, (E, E)); i += 1
        for nm in ("bq", "bk", "bv", "bo"):
            p[f"{pfx}_{nm}"] = w(i, (1, E), 0.05); i += 1
    p["w1"] = w(i, (E, F)); i += 1
    p["b1"] = w(i, (1, F), 0.05); i += 1
    p["w2"] = w(i, (F, E)); i += 1
    p["b2"] = w(i, (1, E), 0.05); i += 1
    for nm in ("g1", "g2", "g3"):
        p[nm] = (1.0 + w(i, (1, E), 0.05)).astype(jnp.float32); i += 1
    for nm in ("be1", "be2", "be3"):
        p[nm] = w(i, (1, E), 0.05); i += 1
    return p


if __name__ == "__main__":
    key0 = jax.random.PRNGKey(0)
    kq, kk, kqp, kkp, kp = jax.random.split(key0, 5)

    B, C, Pq, Pk = 2, D_MODEL, 8, 16
    query = jax.random.normal(kq, (B, C, Pq), dtype=jnp.float32)       # B C Pq
    key_t = jax.random.normal(kk, (B, C, Pk), dtype=jnp.float32)       # B C Pk
    query_pos = jax.random.normal(kqp, (B, Pq, 3), dtype=jnp.float32)  # unused (self_posembed=None)
    key_pos = jax.random.normal(kkp, (B, Pk, 3), dtype=jnp.float32)    # unused (cross_posembed=None)

    params = init_params(kp)

    # one-time parameter/mask packing (outside the per-call path)
    forward = make_decoder_layer(params, batch=B, pq=Pq, pk=Pk)

    out = jax.block_until_ready(forward(query, key_t, query_pos, key_pos))

    ref = reference(query, key_t, params)
    assert out.shape == (B, C, Pq)
    # tolerance loosened slightly vs 1e-4 because the softmax denominator uses the
    # EUP approximate reciprocal (per the performance review).
    np.testing.assert_allclose(np.asarray(out), np.asarray(ref), rtol=2e-3, atol=2e-3)

    print("KERNEL_OK")
</pallas_src>

<mosaic_0001>
module attributes {stable_mosaic.version = 11 : i64} {
  func.func @_decoder_layer_kernel(%arg0: memref<2x32x8xf32, #tpu.memory_space<vmem>>, %arg1: memref<2x32x16xf32, #tpu.memory_space<vmem>>, %arg2: memref<96x384xf32, #tpu.memory_space<vmem>>, %arg3: memref<384x128xf32, #tpu.memory_space<vmem>>, %arg4: memref<13x384xf32, #tpu.memory_space<vmem>>, %arg5: memref<2x32x8xf32, #tpu.memory_space<vmem>>) attributes {dimension_semantics = [], scalar_prefetch = 0 : i64, scratch_operands = 0 : i64, tpu.core_type = #tpu.core_type<tc>} {
    %c0 = arith.constant 0 : index
    %c0_0 = arith.constant 0 : index
    %c0_1 = arith.constant 0 : index
    %0 = vector.load %arg0[%c0, %c0_0, %c0_1] : memref<2x32x8xf32, #tpu.memory_space<vmem>>, vector<1x32x8xf32>
    %1 = vector.shape_cast %0 : vector<1x32x8xf32> to vector<32x8xf32>
    %2 = tpu.transpose %1, [1, 0] : vector<32x8xf32> -> vector<8x32xf32>
    %c1 = arith.constant 1 : index
    %c0_2 = arith.constant 0 : index
    %c0_3 = arith.constant 0 : index
    %3 = vector.load %arg0[%c1, %c0_2, %c0_3] : memref<2x32x8xf32, #tpu.memory_space<vmem>>, vector<1x32x8xf32>
    %4 = vector.shape_cast %3 : vector<1x32x8xf32> to vector<32x8xf32>
    %5 = tpu.transpose %4, [1, 0] : vector<32x8xf32> -> vector<8x32xf32>
    %6 = tpu.concatenate %2, %5 in 0 : vector<8x32xf32>, vector<8x32xf32> -> vector<16x32xf32>
    %c0_4 = arith.constant 0 : index
    %c0_5 = arith.constant 0 : index
    %c0_6 = arith.constant 0 : index
    %7 = vector.load %arg1[%c0_4, %c0_5, %c0_6] : memref<2x32x16xf32, #tpu.memory_space<vmem>>, vector<1x32x16xf32>
    %8 = vector.shape_cast %7 : vector<1x32x16xf32> to vector<32x16xf32>
    %9 = tpu.transpose %8, [1, 0] : vector<32x16xf32> -> vector<16x32xf32>
    %c1_7 = arith.constant 1 : index
    %c0_8 = arith.constant 0 : index
    %c0_9 = arith.constant 0 : index
    %10 = vector.load %arg1[%c1_7, %c0_8, %c0_9] : memref<2x32x16xf32, #tpu.memory_space<vmem>>, vector<1x32x16xf32>
    %11 = vector.shape_cast %10 : vector<1x32x16xf32> to vector<32x16xf32>
    %12 = tpu.transpose %11, [1, 0] : vector<32x16xf32> -> vector<16x32xf32>
    %13 = tpu.concatenate %9, %12 in 0 : vector<16x32xf32>, vector<16x32xf32> -> vector<32x32xf32>
    %c0_10 = arith.constant 0 : index
    %c0_11 = arith.constant 0 : index
    %14 = vector.load %arg2[%c0_10, %c0_11] : memref<96x384xf32, #tpu.memory_space<vmem>>, vector<32x384xf32>
    %cst = arith.constant dense<0.000000e+00> : vector<16x384xf32>
    %15 = tpu.matmul %6, %14, %cst {dimension_numbers = #tpu.dot_dimension_numbers<[1], [0], [0], [1], [0, 0, 1, 1], [], []>} : vector<16x32xf32>, vector<32x384xf32>, vector<16x384xf32> -> vector<16x384xf32>
    %c0_12 = arith.constant 0 : index
    %c0_13 = arith.constant 0 : index
    %16 = vector.load %arg4[%c0_12, %c0_13] : memref<13x384xf32, #tpu.memory_space<vmem>>, vector<1x384xf32>
    %17 = vector.broadcast %16 : vector<1x384xf32> to vector<16x384xf32>
    %18 = arith.addf %15, %17 : vector<16x384xf32>
    %19 = vector.extract_strided_slice %18 {offsets = [0, 0], sizes = [16, 128], strides = [1, 1]} : vector<16x384xf32> to vector<16x128xf32>
    %20 = vector.extract_strided_slice %18 {offsets = [0, 128], sizes = [16, 128], strides = [1, 1]} : vector<16x384xf32> to vector<16x128xf32>
    %21 = vector.extract_strided_slice %18 {offsets = [0, 256], sizes = [16, 128], strides = [1, 1]} : vector<16x384xf32> to vector<16x128xf32>
    %c160 = arith.constant 160 : index
    %c0_14 = arith.constant 0 : index
    %22 = vector.load %arg3[%c160, %c0_14] : memref<384x128xf32, #tpu.memory_space<vmem>>, vector<64x128xf32>
    %c352 = arith.constant 352 : index
    %c0_15 = arith.constant 0 : index
    %23 = vector.load %arg3[%c352, %c0_15] : memref<384x128xf32, #tpu.memory_space<vmem>>, vector<16x64xf32>
    %c0_16 = arith.constant 0 : index
    %c0_17 = arith.constant 0 : index
    %24 = vector.load %arg3[%c0_16, %c0_17] : memref<384x128xf32, #tpu.memory_space<vmem>>, vector<32x32xf32>
    %c3 = arith.constant 3 : index
    %c0_18 = arith.constant 0 : index
    %25 = vector.load %arg4[%c3, %c0_18] : memref<13x384xf32, #tpu.memory_space<vmem>>, vector<1x32xf32>
    %26 = tpu.concatenate %20, %20, %20, %20 in 0 : vector<16x128xf32>, vector<16x128xf32>, vector<16x128xf32>, vector<16x128xf32> -> vector<64x128xf32>
    %27 = arith.mulf %22, %26 : vector<64x128xf32>
    %28 = tpu.concatenate %21, %21, %21, %21 in 0 : vector<16x128xf32>, vector<16x128xf32>, vector<16x128xf32>, vector<16x128xf32> -> vector<64x128xf32>
    %29 = arith.mulf %22, %28 : vector<64x128xf32>
    %cst_19 = arith.constant dense<0.000000e+00> : vector<16x64xf32>
    %30 = tpu.matmul %19, %27, %cst_19 {dimension_numbers = #tpu.dot_dimension_numbers<[1], [1], [0], [0], [0, 0, 1, 0], [], []>} : vector<16x128xf32>, vector<64x128xf32>, vector<16x64xf32> -> vector<16x64xf32>
    %31 = arith.addf %30, %23 : vector<16x64xf32>
    %cst_20 = arith.constant dense<0xFF800000> : vector<16xf32>
    %32 = vector.multi_reduction <maximumf>, %31, %cst_20 [1] : vector<16x64xf32> to vector<16xf32>
    %33 = vector.shape_cast %32 : vector<16xf32> to vector<16x1xf32>
    %34 = vector.broadcast %33 : vector<16x1xf32> to vector<16x64xf32>
    %35 = arith.subf %31, %34 : vector<16x64xf32>
    %36 = math.exp %35 : vector<16x64xf32>
    %cst_21 = arith.constant dense<0.000000e+00> : vector<16x128xf32>
    %37 = tpu.matmul %36, %29, %cst_21 {dimension_numbers = #tpu.dot_dimension_numbers<[1], [0], [0], [1], [0, 0, 1, 1], [], []>} : vector<16x64xf32>, vector<64x128xf32>, vector<16x128xf32> -> vector<16x128xf32>
    %cst_22 = arith.constant dense<0.000000e+00> : vector<16x128xf32>
    %38 = tpu.matmul %36, %22, %cst_22 {dimension_numbers = #tpu.dot_dimension_numbers<[1], [0], [0], [1], [0, 0, 1, 1], [], []>} : vector<16x64xf32>, vector<64x128xf32>, vector<16x128xf32> -> vector<16x128xf32>
    %39 = tpu.reciprocal %38 {approx = true} : vector<16x128xf32> -> vector<16x128xf32>
    %40 = arith.mulf %37, %39 : vector<16x128xf32>
    %41 = vector.extract_strided_slice %40 {offsets = [0, 0], sizes = [16, 32], strides = [1, 1]} : vector<16x128xf32> to vector<16x32xf32>
    %cst_23 = arith.constant dense<0.000000e+00> : vector<16x32xf32>
    %42 = tpu.matmul %41, %24, %cst_23 {dimension_numbers = #tpu.dot_dimension_numbers<[1], [0], [0], [1], [0, 0, 1, 1], [], []>} : vector<16x32xf32>, vector<32x32xf32>, vector<16x32xf32> -> vector<16x32xf32>
    %43 = vector.broadcast %25 : vector<1x32xf32> to vector<16x32xf32>
    %44 = arith.addf %42, %43 : vector<16x32xf32>
    %45 = arith.addf %6, %44 : vector<16x32xf32>
    %c7 = arith.constant 7 : index
    %c0_24 = arith.constant 0 : index
    %46 = vector.load %arg4[%c7, %c0_24] : memref<13x384xf32, #tpu.memory_space<vmem>>, vector<1x32xf32>
    %c8 = arith.constant 8 : index
    %c0_25 = arith.constant 0 : index
    %47 = vector.load %arg4[%c8, %c0_25] : memref<13x384xf32, #tpu.memory_space<vmem>>, vector<1x32xf32>
    %cst_26 = arith.constant dense<0.000000e+00> : vector<16xf32>
    %48 = vector.multi_reduction <add>, %45, %cst_26 [1] : vector<16x32xf32> to vector<16xf32>
    %49 = vector.shape_cast %48 : vector<16xf32> to vector<16x1xf32>
    %cst_27 = arith.constant 3.200000e+01 : f32
    %50 = vector.broadcast %cst_27 : f32 to vector<16x1xf32>
    %51 = arith.divf %49, %50 : vector<16x1xf32>
    %52 = vector.broadcast %51 : vector<16x1xf32> to vector<16x32xf32>
    %53 = arith.subf %45, %52 : vector<16x32xf32>
    %54 = arith.mulf %53, %53 : vector<16x32xf32>
    %cst_28 = arith.constant dense<0.000000e+00> : vector<16xf32>
    %55 = vector.multi_reduction <add>, %54, %cst_28 [1] : vector<16x32xf32> to vector<16xf32>
    %56 = vector.shape_cast %55 : vector<16xf32> to vector<16x1xf32>
    %cst_29 = arith.constant 3.200000e+01 : f32
    %57 = vector.broadcast %cst_29 : f32 to vector<16x1xf32>
    %58 = arith.divf %56, %57 : vector<16x1xf32>
    %59 = vector.broadcast %51 : vector<16x1xf32> to vector<16x32xf32>
    %60 = arith.subf %45, %59 : vector<16x32xf32>
    %cst_30 = arith.constant 9.99999974E-6 : f32
    %61 = vector.broadcast %cst_30 : f32 to vector<16x1xf32>
    %62 = arith.addf %58, %61 : vector<16x1xf32>
    %63 = math.rsqrt %62 : vector<16x1xf32>
    %64 = vector.broadcast %63 : vector<16x1xf32> to vector<16x32xf32>
    %65 = arith.mulf %60, %64 : vector<16x32xf32>
    %66 = vector.broadcast %46 : vector<1x32xf32> to vector<16x32xf32>
    %67 = arith.mulf %65, %66 : vector<16x32xf32>
    %68 = vector.broadcast %47 : vector<1x32xf32> to vector<16x32xf32>
    %69 = arith.addf %67, %68 : vector<16x32xf32>
    %c64 = arith.constant 64 : index
    %c0_31 = arith.constant 0 : index
    %70 = vector.load %arg2[%c64, %c0_31] : memref<96x384xf32, #tpu.memory_space<vmem>>, vector<32x128xf32>
    %cst_32 = arith.constant dense<0.000000e+00> : vector<16x128xf32>
    %71 = tpu.matmul %69, %70, %cst_32 {dimension_numbers = #tpu.dot_dimension_numbers<[1], [0], [0], [1], [0, 0, 1, 1], [], []>} : vector<16x32xf32>, vector<32x128xf32>, vector<16x128xf32> -> vector<16x128xf32>
    %c2 = arith.constant 2 : index
    %c0_33 = arith.constant 0 : index
    %72 = vector.load %arg4[%c2, %c0_33] : memref<13x384xf32, #tpu.memory_space<vmem>>, vector<1x128xf32>
    %73 = vector.broadcast %72 : vector<1x128xf32> to vector<16x128xf32>
    %74 = arith.addf %71, %73 : vector<16x128xf32>
    %c32 = arith.constant 32 : index
    %c0_34 = arith.constant 0 : index
    %75 = vector.load %arg2[%c32, %c0_34] : memref<96x384xf32, #tpu.memory_space<vmem>>, vector<32x256xf32>
    %cst_35 = arith.constant dense<0.000000e+00> : vector<32x256xf32>
    %76 = tpu.matmul %13, %75, %cst_35 {dimension_numbers = #tpu.dot_dimension_numbers<[1], [0], [0], [1], [0, 0, 1, 1], [], []>} : vector<32x32xf32>, vector<32x256xf32>, vector<32x256xf32> -> vector<32x256xf32>
    %c1_36 = arith.constant 1 : index
    %c0_37 = arith.constant 0 : index
    %77 = vector.load %arg4[%c1_36, %c0_37] : memref<13x384xf32, #tpu.memory_space<vmem>>, vector<1x256xf32>
    %78 = vector.broadcast %77 : vector<1x256xf32> to vector<32x256xf32>
    %79 = arith.addf %76, %78 : vector<32x256xf32>
    %80 = vector.extract_strided_slice %79 {offsets = [0, 0], sizes = [32, 128], strides = [1, 1]} : vector<32x256xf32> to vector<32x128xf32>
    %81 = vector.extract_strided_slice %79 {offsets = [0, 128], sizes = [32, 128], strides = [1, 1]} : vector<32x256xf32> to vector<32x128xf32>
    %c224 = arith.constant 224 : index
    %c0_38 = arith.constant 0 : index
    %82 = vector.load %arg3[%c224, %c0_38] : memref<384x128xf32, #tpu.memory_space<vmem>>, vector<128x128xf32>
    %c368 = arith.constant 368 : index
    %c0_39 = arith.constant 0 : index
    %83 = vector.load %arg3[%c368, %c0_39] : memref<384x128xf32, #tpu.memory_space<vmem>>, vector<16x128xf32>
    %c32_40 = arith.constant 32 : index
    %c0_41 = arith.constant 0 : index
    %84 = vector.load %arg3[%c32_40, %c0_41] : memref<384x128xf32, #tpu.memory_space<vmem>>, vector<32x32xf32>
    %c4 = arith.constant 4 : index
    %c0_42 = arith.constant 0 : index
    %85 = vector.load %arg4[%c4, %c0_42] : memref<13x384xf32, #tpu.memory_space<vmem>>, vector<1x32xf32>
    %86 = tpu.concatenate %80, %80, %80, %80 in 0 : vector<32x128xf32>, vector<32x128xf32>, vector<32x128xf32>, vector<32x128xf32> -> vector<128x128xf32>
    %87 = arith.mulf %82, %86 : vector<128x128xf32>
    %88 = tpu.concatenate %81, %81, %81, %81 in 0 : vector<32x128xf32>, vector<32x128xf32>, vector<32x128xf32>, vector<32x128xf32> -> vector<128x128xf32>
    %89 = arith.mulf %82, %88 : vector<128x128xf32>
    %cst_43 = arith.constant dense<0.000000e+00> : vector<16x128xf32>
    %90 = tpu.matmul %74, %87, %cst_43 {dimension_numbers = #tpu.dot_dimension_numbers<[1], [1], [0], [0], [0, 0, 1, 0], [], []>} : vector<16x128xf32>, vector<128x128xf32>, vector<16x128xf32> -> vector<16x128xf32>
    %91 = arith.addf %90, %83 : vector<16x128xf32>
    %cst_44 = arith.constant dense<0xFF800000> : vector<16xf32>
    %92 = vector.multi_reduction <maximumf>, %91, %cst_44 [1] : vector<16x128xf32> to vector<16xf32>
    %93 = vector.shape_cast %92 : vector<16xf32> to vector<16x1xf32>
    %94 = vector.broadcast %93 : vector<16x1xf32> to vector<16x128xf32>
    %95 = arith.subf %91, %94 : vector<16x128xf32>
    %96 = math.exp %95 : vector<16x128xf32>
    %cst_45 = arith.constant dense<0.000000e+00> : vector<16x128xf32>
    %97 = tpu.matmul %96, %89, %cst_45 {dimension_numbers = #tpu.dot_dimension_numbers<[1], [0], [0], [1], [0, 0, 1, 1], [], []>} : vector<16x128xf32>, vector<128x128xf32>, vector<16x128xf32> -> vector<16x128xf32>
    %cst_46 = arith.constant dense<0.000000e+00> : vector<16x128xf32>
    %98 = tpu.matmul %96, %82, %cst_46 {dimension_numbers = #tpu.dot_dimension_numbers<[1], [0], [0], [1], [0, 0, 1, 1], [], []>} : vector<16x128xf32>, vector<128x128xf32>, vector<16x128xf32> -> vector<16x128xf32>
    %99 = tpu.reciprocal %98 {approx = true} : vector<16x128xf32> -> vector<16x128xf32>
    %100 = arith.mulf %97, %99 : vector<16x128xf32>
    %101 = vector.extract_strided_slice %100 {offsets = [0, 0], sizes = [16, 32], strides = [1, 1]} : vector<16x128xf32> to vector<16x32xf32>
    %cst_47 = arith.constant dense<0.000000e+00> : vector<16x32xf32>
    %102 = tpu.matmul %101, %84, %cst_47 {dimension_numbers = #tpu.dot_dimension_numbers<[1], [0], [0], [1], [0, 0, 1, 1], [], []>} : vector<16x32xf32>, vector<32x32xf32>, vector<16x32xf32> -> vector<16x32xf32>
    %103 = vector.broadcast %85 : vector<1x32xf32> to vector<16x32xf32>
    %104 = arith.addf %102, %103 : vector<16x32xf32>
    %105 = arith.addf %69, %104 : vector<16x32xf32>
    %c9 = arith.constant 9 : index
    %c0_48 = arith.constant 0 : index
    %106 = vector.load %arg4[%c9, %c0_48] : memref<13x384xf32, #tpu.memory_space<vmem>>, vector<1x32xf32>
    %c10 = arith.constant 10 : index
    %c0_49 = arith.constant 0 : index
    %107 = vector.load %arg4[%c10, %c0_49] : memref<13x384xf32, #tpu.memory_space<vmem>>, vector<1x32xf32>
    %cst_50 = arith.constant dense<0.000000e+00> : vector<16xf32>
    %108 = vector.multi_reduction <add>, %105, %cst_50 [1] : vector<16x32xf32> to vector<16xf32>
    %109 = vector.shape_cast %108 : vector<16xf32> to vector<16x1xf32>
    %cst_51 = arith.constant 3.200000e+01 : f32
    %110 = vector.broadcast %cst_51 : f32 to vector<16x1xf32>
    %111 = arith.divf %109, %110 : vector<16x1xf32>
    %112 = vector.broadcast %111 : vector<16x1xf32> to vector<16x32xf32>
    %113 = arith.subf %105, %112 : vector<16x32xf32>
    %114 = arith.mulf %113, %113 : vector<16x32xf32>
    %cst_52 = arith.constant dense<0.000000e+00> : vector<16xf32>
    %115 = vector.multi_reduction <add>, %114, %cst_52 [1] : vector<16x32xf32> to vector<16xf32>
    %116 = vector.shape_cast %115 : vector<16xf32> to vector<16x1xf32>
    %cst_53 = arith.constant 3.200000e+01 : f32
    %117 = vector.broadcast %cst_53 : f32 to vector<16x1xf32>
    %118 = arith.divf %116, %117 : vector<16x1xf32>
    %119 = vector.broadcast %111 : vector<16x1xf32> to vector<16x32xf32>
    %120 = arith.subf %105, %119 : vector<16x32xf32>
    %cst_54 = arith.constant 9.99999974E-6 : f32
    %121 = vector.broadcast %cst_54 : f32 to vector<16x1xf32>
    %122 = arith.addf %118, %121 : vector<16x1xf32>
    %123 = math.rsqrt %122 : vector<16x1xf32>
    %124 = vector.broadcast %123 : vector<16x1xf32> to vector<16x32xf32>
    %125 = arith.mulf %120, %124 : vector<16x32xf32>
    %126 = vector.broadcast %106 : vector<1x32xf32> to vector<16x32xf32>
    %127 = arith.mulf %125, %126 : vector<16x32xf32>
    %128 = vector.broadcast %107 : vector<1x32xf32> to vector<16x32xf32>
    %129 = arith.addf %127, %128 : vector<16x32xf32>
    %c64_55 = arith.constant 64 : index
    %c0_56 = arith.constant 0 : index
    %130 = vector.load %arg3[%c64_55, %c0_56] : memref<384x128xf32, #tpu.memory_space<vmem>>, vector<32x64xf32>
    %cst_57 = arith.constant dense<0.000000e+00> : vector<16x64xf32>
    %131 = tpu.matmul %129, %130, %cst_57 {dimension_numbers = #tpu.dot_dimension_numbers<[1], [0], [0], [1], [0, 0, 1, 1], [], []>} : vector<16x32xf32>, vector<32x64xf32>, vector<16x64xf32> -> vector<16x64xf32>
    %c5 = arith.constant 5 : index
    %c0_58 = arith.constant 0 : index
    %132 = vector.load %arg4[%c5, %c0_58] : memref<13x384xf32, #tpu.memory_space<vmem>>, vector<1x64xf32>
    %133 = vector.broadcast %132 : vector<1x64xf32> to vector<16x64xf32>
    %134 = arith.addf %131, %133 : vector<16x64xf32>
    %cst_59 = arith.constant 0.000000e+00 : f32
    %135 = vector.broadcast %cst_59 : f32 to vector<16x64xf32>
    %136 = arith.maximumf %134, %135 : vector<16x64xf32>
    %c96 = arith.constant 96 : index
    %c0_60 = arith.constant 0 : index
    %137 = vector.load %arg3[%c96, %c0_60] : memref<384x128xf32, #tpu.memory_space<vmem>>, vector<64x32xf32>
    %cst_61 = arith.constant dense<0.000000e+00> : vector<16x32xf32>
    %138 = tpu.matmul %136, %137, %cst_61 {dimension_numbers = #tpu.dot_dimension_numbers<[1], [0], [0], [1], [0, 0, 1, 1], [], []>} : vector<16x64xf32>, vector<64x32xf32>, vector<16x32xf32> -> vector<16x32xf32>
    %c6 = arith.constant 6 : index
    %c0_62 = arith.constant 0 : index
    %139 = vector.load %arg4[%c6, %c0_62] : memref<13x384xf32, #tpu.memory_space<vmem>>, vector<1x32xf32>
    %140 = vector.broadcast %139 : vector<1x32xf32> to vector<16x32xf32>
    %141 = arith.addf %138, %140 : vector<16x32xf32>
    %142 = arith.addf %129, %141 : vector<16x32xf32>
    %c11 = arith.constant 11 : index
    %c0_63 = arith.constant 0 : index
    %143 = vector.load %arg4[%c11, %c0_63] : memref<13x384xf32, #tpu.memory_space<vmem>>, vector<1x32xf32>
    %c12 = arith.constant 12 : index
    %c0_64 = arith.constant 0 : index
    %144 = vector.load %arg4[%c12, %c0_64] : memref<13x384xf32, #tpu.memory_space<vmem>>, vector<1x32xf32>
    %cst_65 = arith.constant dense<0.000000e+00> : vector<16xf32>
    %145 = vector.multi_reduction <add>, %142, %cst_65 [1] : vector<16x32xf32> to vector<16xf32>
    %146 = vector.shape_cast %145 : vector<16xf32> to vector<16x1xf32>
    %cst_66 = arith.constant 3.200000e+01 : f32
    %147 = vector.broadcast %cst_66 : f32 to vector<16x1xf32>
    %148 = arith.divf %146, %147 : vector<16x1xf32>
    %149 = vector.broadcast %148 : vector<16x1xf32> to vector<16x32xf32>
    %150 = arith.subf %142, %149 : vector<16x32xf32>
    %151 = arith.mulf %150, %150 : vector<16x32xf32>
    %cst_67 = arith.constant dense<0.000000e+00> : vector<16xf32>
    %152 = vector.multi_reduction <add>, %151, %cst_67 [1] : vector<16x32xf32> to vector<16xf32>
    %153 = vector.shape_cast %152 : vector<16xf32> to vector<16x1xf32>
    %cst_68 = arith.constant 3.200000e+01 : f32
    %154 = vector.broadcast %cst_68 : f32 to vector<16x1xf32>
    %155 = arith.divf %153, %154 : vector<16x1xf32>
    %156 = vector.broadcast %148 : vector<16x1xf32> to vector<16x32xf32>
    %157 = arith.subf %142, %156 : vector<16x32xf32>
    %cst_69 = arith.constant 9.99999974E-6 : f32
    %158 = vector.broadcast %cst_69 : f32 to vector<16x1xf32>
    %159 = arith.addf %155, %158 : vector<16x1xf32>
    %160 = math.rsqrt %159 : vector<16x1xf32>
    %161 = vector.broadcast %160 : vector<16x1xf32> to vector<16x32xf32>
    %162 = arith.mulf %157, %161 : vector<16x32xf32>
    %163 = vector.broadcast %143 : vector<1x32xf32> to vector<16x32xf32>
    %164 = arith.mulf %162, %163 : vector<16x32xf32>
    %165 = vector.broadcast %144 : vector<1x32xf32> to vector<16x32xf32>
    %166 = arith.addf %164, %165 : vector<16x32xf32>
    %167 = tpu.transpose %166, [1, 0] : vector<16x32xf32> -> vector<32x16xf32>
    %168 = vector.extract_strided_slice %167 {offsets = [0, 0], sizes = [32, 8], strides = [1, 1]} : vector<32x16xf32> to vector<32x8xf32>
    %c0_70 = arith.constant 0 : index
    %c0_71 = arith.constant 0 : index
    %c0_72 = arith.constant 0 : index
    %169 = vector.load %arg5[%c0_70, %c0_71, %c0_72] : memref<2x32x8xf32, #tpu.memory_space<vmem>>, vector<1x32x8xf32>
    %170 = vector.shape_cast %169 : vector<1x32x8xf32> to vector<32x8xf32>
    %171 = vector.shape_cast %168 : vector<32x8xf32> to vector<1x32x8xf32>
    tpu.vector_store %arg5[%c0_70, %c0_71, %c0_72], %171 {strides = array<i32>} : memref<2x32x8xf32, #tpu.memory_space<vmem>>, vector<1x32x8xf32>,
    %172 = vector.extract_strided_slice %167 {offsets = [0, 8], sizes = [32, 8], strides = [1, 1]} : vector<32x16xf32> to vector<32x8xf32>
    %c1_73 = arith.constant 1 : index
    %c0_74 = arith.constant 0 : index
    %c0_75 = arith.constant 0 : index
    %173 = vector.load %arg5[%c1_73, %c0_74, %c0_75] : memref<2x32x8xf32, #tpu.memory_space<vmem>>, vector<1x32x8xf32>
    %174 = vector.shape_cast %173 : vector<1x32x8xf32> to vector<32x8xf32>
    %175 = vector.shape_cast %172 : vector<32x8xf32> to vector<1x32x8xf32>
    tpu.vector_store %arg5[%c1_73, %c0_74, %c0_75], %175 {strides = array<i32>} : memref<2x32x8xf32, #tpu.memory_space<vmem>>, vector<1x32x8xf32>,
    return
  }
}

</mosaic_0001>

<bundles_post_ra>
// kernel: forward.1
= control target key start
LH: loop header
LB: loop body
LE: loop exit
PB: predicated region body
PF: predicated region fallthrough
CT: control target
= control target key end

     0   :  { %10 = vsyncpa [#allocation3], 0  ;;  %s2571_s0 = inlined_call_operand.vmem [shape: f32[2,32,8], index: 0, kind: input, shape index: {}]   ;;  %s2572_s1 = inlined_call_operand.vmem [shape: f32[2,32,16], index: 1, kind: input, shape index: {}]   ;;  %s2573_s2 = inlined_call_operand.hbm [shape: f32[96,384], index: 2, kind: input, shape index: {}]   ;;  %s2574_s3 = inlined_call_operand.hbm [shape: f32[384,128], index: 3, kind: input, shape index: {}]   ;;  %s2575_s4 = inlined_call_operand.vmem [shape: f32[13,384], index: 4, kind: input, shape index: {}]   ;;  %s2576_s5 = inlined_call_operand.vmem [shape: f32[2,32,8], index: 5, kind: output, shape index: {}]  }
   0x1   :  { %11 = vsyncpa [#allocation5], 0  ;;  %s2145_s18 = smov [#allocation2]  }
   0x2   :  { %s21_s19 = sshll.u32 %s2145_s18, 4  ;;  %s22_s19 = int_to_ptr.vmem [resolvable:$true] %s21_s19 }
   0x3   :  { %s2109_s20 = scalar_lea.vmem %s22_s19, 4608  ;;  %p2114_p1 = scmp.lt.s32.totalorder %s22_s19, %s22_s19 }
   0x4   :  { %p2110_p0 = scmp.ne.s32.totalorder %s22_s19, %s2109_s20  ;;  %p2115_p2 = scmp.lt.s32.totalorder %s2109_s20, %s2109_s20 }
   0x6   :  { %p2116_p3 = por %p2115_p2, %p2114_p1 }
   0x8   :  { %p2117_p4 = pnand %p2116_p3, %p2110_p0 }
   0xa   :  { %2120 = shalt.err (!%p2117_p4)
}
   0xb   :  { %s2146_s21 = smov 384   ;;  %s2147_s22 = smov 24  }
   0xc   :  { %27 = dma.hbm_to_vmem [thread:$0]  %s2573_s2, 4608, %s22_s19, [#allocation3], %s2146_s21, %s2146_s21, %s2147_s22  }
   0xd   :  { %s2148_s25 = smov [#allocation4]  }
   0xe   :  { %s33_s26 = sshll.u32 %s2148_s25, 4  ;;  %s34_s26 = int_to_ptr.vmem [resolvable:$true] %s33_s26 }
   0xf   :  { %s2129_s27 = scalar_lea.vmem %s34_s26, 6144  ;;  %p2134_p6 = scmp.lt.s32.totalorder %s34_s26, %s34_s26 }
  0x10   :  { %p2130_p5 = scmp.ne.s32.totalorder %s34_s26, %s2129_s27  ;;  %p2135_p7 = scmp.lt.s32.totalorder %s2129_s27, %s2129_s27 }
  0x12   :  { %p2136_p8 = por %p2135_p7, %p2134_p6 }
  0x14   :  { %p2137_p9 = pnand %p2136_p8, %p2130_p5 }
  0x16   :  { %2140 = shalt.err (!%p2137_p9)
}
  0x17   :  { %s2149_s28 = smov 128   ;;  %s2150_s29 = smov 8  }
  0x18   :  { %39 = dma.hbm_to_vmem [thread:$0]  %s2574_s3, 6144, %s34_s26, [#allocation5], %s2149_s28, %s2149_s28, %s2150_s29  }
  0x19   :  { %2141 = dma.done.wait [#allocation3], 4608  }
  0x1a   :  { %2142 = vsyncadd [#allocation3], 4294962688 }
  0x1b   :  { %2143 = dma.done.wait [#allocation5], 6144  }
  0x1c   :  { %2144 = vsyncadd [#allocation5], 4294961152  ;;  %v2151_v0 = vmov 0.0   ;;  %v48_v1 = vld [vmem:[%s2571_s0] sm:$0xff]  ;;  %v49_v3 = vld [vmem:[%s2571_s0 + $0x8] sm:$0xff]  ;;  %vm223_vm0 = vcmask 261120   ;;  %v208_v23 = vlaneseq }
  0x1d   :  { %294 = vmatprep.mubr.f32.mxu0 %v2151_v0  ;;  %v1670_v2 = vld [vmem:[%s2571_s0 + $0x20] sm:$0xff]  ;;  %52 = vxpose.xlu0.b32.start [1/4] (short) (narrow) %v48_v1, 8  ;;  %v1671_v4 = vld [vmem:[%s2571_s0 + $0x28] sm:$0xff]  ;;  %v204_v5 = vld [vmem:[#allocation2 + $0x50] sm:$0xff]  ;;  %vm488_vm1 = vcmask 523264   ;;  %vm1638_vm2 = vcmask 64512  }
  0x1e   :  { %89 = vxpose.xlu1.b32.start [1/4] (short) (narrow) %v1670_v2, 8  ;;  %254 = vmatprep.subr.mxu0 %v204_v5  ;;  %v203_v6 = vld [vmem:[#allocation2 + $0x48] sm:$0xff]  ;;  %v205_v7 = vld [vmem:[#allocation2 + $0x58] sm:$0xff]  ;;  %v200_v9 = vld [vmem:[#allocation2 + $0x30] sm:$0xff]  ;;  %v2227_v24 = vshrl.u32 %v208_v23, 7  ;;  %s2152_s9 = smov 120  }
  0x1f   :  { %v201_v8 = vld [vmem:[#allocation2 + $0x38] sm:$0xff]  ;;  %255 = vmatpush1.msra.mxu0 %v203_v6  ;;  %1829 = vmatprep.subr.mxu1 %v205_v7  ;;  %v202_v10 = vld [vmem:[#allocation2 + $0x40] sm:$0xff]  ;;  %v50_v12 = vld [vmem:[%s2571_s0 + $0x10] sm:$0xff] }
  0x20   :  { %v198_v11 = vld [vmem:[#allocation2 + $0x20] sm:$0xff]  ;;  %v1672_v13 = vld [vmem:[%s2571_s0 + $0x30] sm:$0xff]  ;;  %256 = vmatprep.subr.mxu0 %v201_v8  ;;  %1830 = vmatpush3.msra.mxu1 %v205_v7  ;;  %v197_v14 = vld [vmem:[#allocation2 + $0x18] sm:$0xff]  ;;  %v210_v25 = vsub.s32 0, %v2227_v24  ;;  %v218_v27 = vsub.s32 2, %v2227_v24  ;;  %v214_v30 = vsub.s32 1, %v2227_v24 }
  0x21   :  { %53 = vxpose.xlu0.b32.cont [2/4] (short) (narrow) %v49_v3, 8  ;;  %257 = vmatpush1.msra.mxu0 %v200_v9  ;;  %v199_v15 = vld [vmem:[#allocation2 + $0x28] sm:$0xff]  ;;  %v194_v17 = vld [vmem:[#allocation2] sm:$0xff]  ;;  %v196_v18 = vld [vmem:[#allocation2 + $0x10] sm:$0xff] }
  0x22   :  { %90 = vxpose.xlu1.b32.cont [2/4] (short) (narrow) %v1671_v4, 8  ;;  %1831 = vmatprep.subr.mxu1 %v202_v10  ;;  %v195_v16 = vld [vmem:[#allocation2 + $0x8] sm:$0xff]  ;;  %v51_v19 = vld [vmem:[%s2571_s0 + $0x18] sm:$0xff]  ;;  %v2244_v39 = vld [vmem:[#allocation4 + $0xd0] sm:$0xff] }
  0x23   :  { %258 = vmatprep.subr.mxu0 %v198_v11  ;;  %1832 = vmatpush3.msra.mxu1 %v202_v10  ;;  %v1673_v20 = vld [vmem:[%s2571_s0 + $0x38] sm:$0xff]  ;;  %v206_v26 = vld [vmem:[%s2575_s4] ss:$8 sm:$0x7] }
  0x24   :  { %259 = vmatpush1.msra.mxu0 %v197_v14  ;;  %1833 = vmatprep.subr.mxu1 %v199_v15  ;;  %v2236_v28 = vrot.slane %v206_v26, %v210_v25  ;;  %v219_v29 = vrot.slane %v206_v26, %v218_v27  ;;  %v2240_v34 = vld [vmem:[#allocation4 + $0xd8] sm:$0xff]  ;;  %v215_v37 = vrot.slane %v206_v26, %v214_v30  ;;  %v2246_v40 = vld [vmem:[#allocation4 + $0xc8] sm:$0xff]  ;;  %v2252_v50 = vld [vmem:[#allocation4 + $0xc0] sm:$0xff] }
  0x25   :  { %54 = vxpose.xlu0.b32.cont [3/4] (short) (narrow) %v50_v12, 8  ;;  %260 = vmatprep.subr.mxu0 %v195_v16  ;;  %v2254_v51 = vld [vmem:[#allocation4 + $0xb8] sm:$0xff]  ;;  %v2259_v55 = vld [vmem:[#allocation4 + $0xb0] sm:$0xff]  ;;  %v2261_v56 = vld [vmem:[#allocation4 + $0xa8] sm:$0xff] }
  0x26   :  { %91 = vxpose.xlu1.b32.cont [3/4] (short) (narrow) %v1672_v13, 8  ;;  %1834 = vmatpush3.msra.mxu1 %v199_v15  ;;  %v382_v60 = vld [vmem:[#allocation4 + $0xa0] sm:$0xff]  ;;  %v391_v5 = vld [vmem:[#allocation4 + $0x168] sm:$0xff]  ;;  %v395_v23 = vld [vmem:[#allocation4 + $0x18] sm:$0xff] }
  0x27   :  { %261 = vmatpush1.msra.mxu0 %v194_v17  ;;  %1835 = vmatprep.subr.mxu1 %v196_v18  ;;  %v390_v7 = vld [vmem:[#allocation4 + $0x160] sm:$0xff]  ;;  %v394_v26 = vld [vmem:[#allocation4 + $0x10] sm:$0xff]  ;;  %v393_v27 = vld [vmem:[#allocation4 + $0x8] sm:$0xff] }
  0x28   :  { %1836 = vmatpush3.msra.mxu1 %v196_v18 }
  0x29   :  { %55 = vxpose.xlu0.b32.end [4/4] (short) (narrow) %v51_v19, 8 }
  0x2a   :  { %92 = vxpose.xlu1.b32.end [4/4] (short) (narrow) %v1673_v20, 8 }
  0x99   :  { %v2214_v21 = vpop.trf.xlu0 }
  0x9a   :  { %v2216_v22 = vpop.trf.xlu1  ;;  %1678 = vmatmul.mubr.msk.f32.vlgmr.msra.gmra.mxu0 %vm223_vm0, %v2214_v21  ;;  %1837 = vmatprep.mubr.msk.f32.mxu1 %vm223_vm0, %v2214_v21 }
  0x9b   :  { %1838 = vmatmul.mubr.msk.f32.vlgmr.msra.gmra.mxu1 %vm223_vm0, %v2216_v22  ;;  %300 = vmatprep.mubr.f32.mxu0 %v2151_v0 }
  0x9e   :  { %1679 = vmatmul.mubr.msk.f32.gmra.mxu0 %vm223_vm0, %v2216_v22 }
 0x15a   :  { %v296_v31 = vpop.f32.mrf.mxu0 }
 0x15b   :  { %v297_v32 = vadd.f32 %v296_v31, %v2236_v28  ;;  %v1839_v33 = vpop.f32.mrf.mxu1 }
 0x15c   :  { %v379_v35 = vadd.f32 %v1839_v33, %v219_v29  ;;  %v298_v36 = vpop.f32.mrf.mxu0 }
 0x15d   :  { %v373_v38 = vpop.f32.mrf.mxu1  ;;  %1856 = vmatprep.mubr.f32.mxu0 %v297_v32  ;;  %v299_v47 = vadd.f32 %v298_v36, %v215_v37 }
 0x15e   :  { %v374_v41 = vadd.f32 %v373_v38, %v219_v29  ;;  %v302_v42 = vpop.f32.mrf.mxu0  ;;  %v412_v43 = vmul.f32 %v2240_v34, %v379_v35  ;;  %v410_v46 = vmul.f32 %v2246_v40, %v379_v35  ;;  %v408_v54 = vmul.f32 %v2254_v51, %v379_v35  ;;  %v121_v38 = vld [vmem:[%s2572_s1] sm:$0xff] }
 0x15f   :  { %v403_v53 = vmul.f32 %v2244_v39, %v299_v47  ;;  %v406_v59 = vmul.f32 %v2261_v56, %v379_v35  ;;  %v401_v62 = vmul.f32 %v2252_v50, %v299_v47  ;;  %v399_v1 = vmul.f32 %v2259_v55, %v299_v47 }
 0x160   :  { %v304_v44 = vpop.f32.mrf.mxu0  ;;  %1859 = vmatprep.subr.mxu1 %v412_v43  ;;  %v411_v45 = vmul.f32 %v2244_v39, %v374_v41  ;;  %v409_v52 = vmul.f32 %v2252_v50, %v374_v41  ;;  %v407_v57 = vmul.f32 %v2259_v55, %v374_v41  ;;  %v405_v61 = vmul.f32 %v382_v60, %v374_v41  ;;  %v124_v41 = vld [vmem:[%s2572_s1 + $0x18] sm:$0xff] }
 0x161   :  { %v305_v48 = vadd.f32 %v304_v44, %v215_v37  ;;  %1860 = vmatpush3.msra.mxu1 %v412_v43  ;;  %v397_v3 = vmul.f32 %v382_v60, %v299_v47  ;;  %v303_v4 = vadd.f32 %v302_v42, %v2236_v28  ;;  %v392_v28 = vld [vmem:[#allocation4] sm:$0xff] }
 0x162   :  { %1861 = vmatprep.subr.mxu1 %v411_v45  ;;  %v396_v42 = vld [vmem:[%s2575_s4 + $0x3] ss:$0 sm:$0xff] }
 0x163   :  { %1862 = vmatpush3.msra.mxu1 %v411_v45  ;;  %v404_v49 = vmul.f32 %v2240_v34, %v305_v48  ;;  %v402_v58 = vmul.f32 %v2246_v40, %v305_v48  ;;  %v400_v63 = vmul.f32 %v2254_v51, %v305_v48  ;;  %v398_v2 = vmul.f32 %v2261_v56, %v305_v48 }
 0x164   :  { %1863 = vmatprep.subr.mxu1 %v410_v46 }
 0x165   :  { %1840 = vmatprep.subr.mxu0 %v404_v49  ;;  %1864 = vmatpush3.msra.mxu1 %v410_v46 }
 0x166   :  { %1841 = vmatpush3.xpose.msra.mxu0 %v404_v49  ;;  %1865 = vmatprep.subr.mxu1 %v409_v52 }
 0x167   :  { %1842 = vmatprep.subr.mxu0 %v403_v53  ;;  %1866 = vmatpush3.msra.mxu1 %v409_v52  ;;  %v869_v52 = vld [vmem:[#allocation2 + $0xa8] sm:$0xff] }
 0x168   :  { %1867 = vmatprep.subr.mxu1 %v408_v54 }
 0x169   :  { %1868 = vmatpush3.msra.mxu1 %v408_v54  ;;  %v867_v54 = vld [vmem:[#allocation2 + $0x90] sm:$0xff] }
 0x16a   :  { %1843 = vmatpush3.xpose.msra.mxu0 %v403_v53  ;;  %1869 = vmatprep.subr.mxu1 %v407_v57  ;;  %v868_v53 = vld [vmem:[#allocation2 + $0x98] sm:$0xff] }
 0x16b   :  { %1844 = vmatprep.subr.mxu0 %v402_v58  ;;  %1870 = vmatpush3.msra.mxu1 %v407_v57  ;;  %v864_v57 = vld [vmem:[#allocation2 + $0x68] sm:$0xff] }
 0x16c   :  { %1871 = vmatprep.subr.mxu1 %v406_v59 }
 0x16d   :  { %1872 = vmatpush3.msra.mxu1 %v406_v59  ;;  %v1674_v59 = vld [vmem:[%s2572_s1 + $0x20] sm:$0xff] }
 0x16e   :  { %1845 = vmatpush3.xpose.msra.mxu0 %v402_v58  ;;  %1873 = vmatprep.subr.mxu1 %v405_v61 }
 0x16f   :  { %1846 = vmatprep.subr.mxu0 %v401_v62  ;;  %1874 = vmatpush3.msra.mxu1 %v405_v61  ;;  %v1676_v61 = vld [vmem:[%s2572_s1 + $0x30] sm:$0xff] }
 0x170   :  { %1878 = vmatprep.subr.mxu1 %v2240_v34 }
 0x172   :  { %1847 = vmatpush3.xpose.msra.mxu0 %v401_v62  ;;  %v1677_v62 = vld [vmem:[%s2572_s1 + $0x38] sm:$0xff] }
 0x173   :  { %1848 = vmatprep.subr.mxu0 %v400_v63 }
 0x176   :  { %1849 = vmatpush3.xpose.msra.mxu0 %v400_v63 }
 0x177   :  { %1850 = vmatprep.subr.mxu0 %v399_v1 }
 0x17a   :  { %1851 = vmatpush3.xpose.msra.mxu0 %v399_v1 }
 0x17b   :  { %1852 = vmatprep.subr.mxu0 %v398_v2 }
 0x17e   :  { %1853 = vmatpush3.xpose.msra.mxu0 %v398_v2 }
 0x17f   :  { %1854 = vmatprep.subr.mxu0 %v397_v3 }
 0x182   :  { %1855 = vmatpush3.xpose.msra.mxu0 %v397_v3 }
 0x183   :  { %1897 = vmatprep.subr.mxu0 %v395_v23 }
 0x185   :  { %1857 = vmatmul.mubr.f32.vlgmr.msra.gmra.mxu0 %v303_v4 }
 0x186   :  { %1898 = vmatpush3.msra.mxu0 %v395_v23 }
 0x187   :  { %1899 = vmatprep.subr.mxu0 %v394_v26 }
 0x188   :  { %1900 = vmatpush3.msra.mxu0 %v394_v26 }
 0x189   :  { %1901 = vmatprep.subr.mxu0 %v393_v27 }
 0x18a   :  { %1902 = vmatpush3.msra.mxu0 %v393_v27 }
 0x18b   :  { %1903 = vmatprep.subr.mxu0 %v392_v28 }
 0x18c   :  { %1904 = vmatpush3.msra.mxu0 %v392_v28  ;;  %v744_v28 = vld [vmem:[%s2575_s4 + $0x7] ss:$0 sm:$0xff] }
 0x245   :  { %v1858_v6 = vpop.f32.mrf.mxu0 }
 0x246   :  { %v485_v8 = vadd.f32 %v1858_v6, %v391_v5 }
 0x247   :  { %v479_v9 = vpop.f32.mrf.mxu0 }
 0x248   :  { %v480_v10 = vadd.f32 %v479_v9, %v390_v7  ;;  %v492_v11 = vsel %vm488_vm1, %v485_v8, -inf }
 0x249   :  { %493 = vmax.xlane.f32.xlu1 %v492_v11  ;;  %v779_v11 = vld [vmem:[#allocation2 + $0xf0] sm:$0xff] }
 0x24a   :  { %v489_v12 = vsel %vm488_vm1, %v480_v10, -inf }
 0x24b   :  { %490 = vmax.xlane.f32.xlu0 %v489_v12  ;;  %v778_v12 = vld [vmem:[#allocation2 + $0xd8] sm:$0xff] }
 0x278   :  { %125 = vxpose.xlu0.b32.start [1/4] (short) (narrow) %v121_v38, 16 }
 0x2d2   :  { %v494_v13 = vpop.xlane.xlu1 %493 }
 0x2d3   :  { %v496_v14 = vsub.f32 %v485_v8, %v494_v13  ;;  %v777_v13 = vld [vmem:[#allocation2 + $0xc0] sm:$0xff] }
 0x2d4   :  { %v491_v15 = vpop.xlane.xlu0 %490 }
 0x2d5   :  { %v495_v16 = vsub.f32 %v480_v10, %v491_v15  ;;  %v499_v17 = vmul.f32 1.442695, %v496_v14  ;;  %v780_v10 = vld [vmem:[#allocation2 + $0x108] sm:$0xff] }
 0x2d7   :  { %v497_v18 = vmul.f32 1.442695, %v495_v16 }
 0x2d9   :  { %2073 = vpow2.f32 %v497_v18 }
 0x2da   :  { %2075 = vpow2.f32 %v499_v17 }
 0x2e6   :  { %v2074_v19 = vpop.eup %2073 }
 0x2e7   :  { %v2076_v20 = vpop.eup %2075  ;;  %1875 = vmatprep.mubr.msk.f32.mxu1 %vm488_vm1, %v2074_v19 }
 0x2e8   :  { %1876 = vmatmul.mubr.msk.f32.vlgmr.msra.gmra.mxu1 %vm488_vm1, %v2076_v20 }
 0x2e9   :  { %1879 = vmatpush3.msra.mxu1 %v2240_v34  ;;  %1894 = vmatprep.mubr.msk.f32.mxu1 %vm488_vm1, %v2074_v19 }
 0x2ea   :  { %1880 = vmatprep.subr.mxu1 %v2244_v39 }
 0x2eb   :  { %1881 = vmatpush3.msra.mxu1 %v2244_v39  ;;  %v122_v39 = vld [vmem:[%s2572_s1 + $0x8] sm:$0xff] }
 0x2ec   :  { %1882 = vmatprep.subr.mxu1 %v2246_v40  ;;  %126 = vxpose.xlu0.b32.cont [2/4] (short) (narrow) %v122_v39, 16 }
 0x2ed   :  { %1883 = vmatpush3.msra.mxu1 %v2246_v40  ;;  %v123_v40 = vld [vmem:[%s2572_s1 + $0x10] sm:$0xff] }
 0x2ee   :  { %1884 = vmatprep.subr.mxu1 %v2252_v50 }
 0x2ef   :  { %1885 = vmatpush3.msra.mxu1 %v2252_v50 }
 0x2f0   :  { %1886 = vmatprep.subr.mxu1 %v2254_v51  ;;  %127 = vxpose.xlu0.b32.cont [3/4] (short) (narrow) %v123_v40, 16  ;;  %v1690_v40 = vld [vmem:[%s2575_s4 + $0x1] ss:$8 sm:$0x3] }
 0x2f1   :  { %1887 = vmatpush3.msra.mxu1 %v2254_v51  ;;  %v870_v51 = vld [vmem:[#allocation2 + $0xb0] sm:$0xff] }
 0x2f2   :  { %1888 = vmatprep.subr.mxu1 %v2259_v55  ;;  %920 = vmatprep.subr.mxu0 %v870_v51 }
 0x2f3   :  { %1889 = vmatpush3.msra.mxu1 %v2259_v55  ;;  %v866_v55 = vld [vmem:[#allocation2 + $0x80] sm:$0xff] }
 0x2f4   :  { %1890 = vmatprep.subr.mxu1 %v2261_v56  ;;  %128 = vxpose.xlu0.b32.end [4/4] (short) (narrow) %v124_v41, 16 }
 0x2f5   :  { %1891 = vmatpush3.msra.mxu1 %v2261_v56  ;;  %v865_v56 = vld [vmem:[#allocation2 + $0x78] sm:$0xff] }
 0x2f6   :  { %1892 = vmatprep.subr.mxu1 %v382_v60 }
 0x2f7   :  { %1893 = vmatpush3.msra.mxu1 %v382_v60  ;;  %v1675_v60 = vld [vmem:[%s2572_s1 + $0x28] sm:$0xff] }
 0x2f8   :  { %1895 = vmatmul.mubr.msk.f32.vlgmr.msra.gmra.mxu1 %vm488_vm1, %v2076_v20  ;;  %1908 = vmatprep.subr.mxu1 %v780_v10 }
 0x2f9   :  { %1909 = vmatpush3.msra.mxu1 %v780_v10 }
 0x2fa   :  { %1910 = vmatprep.subr.mxu1 %v779_v11 }
 0x2fb   :  { %1911 = vmatpush3.msra.mxu1 %v779_v11  ;;  %v2419_v11 = vld [vmem:[#allocation4 + $0x110] sm:$0xff] }
 0x2fc   :  { %1912 = vmatprep.subr.mxu1 %v778_v12 }
 0x2fd   :  { %1913 = vmatpush3.msra.mxu1 %v778_v12 }
 0x2fe   :  { %1914 = vmatprep.subr.mxu1 %v777_v13 }
 0x2ff   :  { %1915 = vmatpush3.msra.mxu1 %v777_v13  ;;  %v2423_v13 = vld [vmem:[#allocation4 + $0x108] sm:$0xff] }
 0x3a8   :  { %v1877_v29 = vpop.f32.mrf.mxu1 }
 0x3aa   :  { %v573_v31 = vpop.f32.mrf.mxu1 }
 0x3b8   :  { %v1896_v32 = vpop.f32.mrf.mxu1 }
 0x3b9   :  { %2077 = vrcp.f32 %v1896_v32  ;;  %v745_v32 = vld [vmem:[%s2575_s4 + $0x18] ss:$0 sm:$0xff] }
 0x3ba   :  { %v648_v33 = vpop.f32.mrf.mxu1 }
 0x3bb   :  { %2079 = vrcp.f32 %v648_v33 }
 0x3c6   :  { %v2078_v34 = vpop.eup %2077 }
 0x3c7   :  { %v660_v37 = vmul.f32 %v2078_v34, %v1877_v29 }
 0x3c8   :  { %v2080_v35 = vpop.eup %2079 }
 0x3c9   :  { %v659_v36 = vmul.f32 %v2080_v35, %v573_v31 }
 0x3cb   :  { %1905 = vmatprep.mubr.msk.f32.mxu0 %vm223_vm0, %v659_v36 }
 0x3cc   :  { %1906 = vmatmul.mubr.msk.f32.vlgmr.msra.gmra.mxu0 %vm223_vm0, %v660_v37 }
 0x3cd   :  { %960 = vmatprep.mubr.f32.mxu0 %v2151_v0  ;;  %921 = vmatpush1.msra.mxu0 %v869_v52 }
 0x3ce   :  { %922 = vmatprep.subr.mxu0 %v868_v53 }
 0x3cf   :  { %923 = vmatpush1.msra.mxu0 %v867_v54  ;;  %v2375_v54 = vld [vmem:[#allocation4 + $0x148] sm:$0xff] }
 0x3d0   :  { %924 = vmatprep.subr.mxu0 %v866_v55 }
 0x3d1   :  { %925 = vmatpush1.msra.mxu0 %v865_v56 }
 0x3d2   :  { %926 = vmatprep.subr.mxu0 %v864_v57 }
 0x48c   :  { %v1907_v43 = vpop.f32.mrf.mxu0 }
 0x48d   :  { %v739_v44 = vadd.f32 %v1907_v43, %v396_v42 }
 0x48e   :  { %v733_v45 = vpop.f32.mrf.mxu0 }
 0x48f   :  { %v734_v46 = vadd.f32 %v733_v45, %v396_v42  ;;  %v743_v47 = vadd.f32 %v739_v44, %v2216_v22  ;;  %v863_v22 = vld [vmem:[#allocation2 + $0x60] sm:$0xff]  ;;  %v877_v42 = vrot.slane %v1690_v40, %v210_v25  ;;  %v881_v44 = vrot.slane %v1690_v40, %v214_v30 }
 0x490   :  { %927 = vmatpush1.msra.mxu0 %v863_v22 }
 0x491   :  { %v749_v48 = vsel %vm223_vm0, %v743_v47, 0.0  ;;  %v742_v49 = vadd.f32 %v734_v46, %v2214_v21  ;;  %v141_v21 = vpop.trf.xlu0 }
 0x492   :  { %750 = vadd.xlane.f32.xlu1 %v749_v48  ;;  %1691 = vmatmul.mubr.msk.f32.vlgmr.msra.gmra.mxu0 %vm223_vm0, %v141_v21  ;;  %v2359_v48 = vld [vmem:[#allocation4 + $0x150] sm:$0xff] }
 0x493   :  { %v746_v50 = vsel %vm223_vm0, %v742_v49, 0.0  ;;  %966 = vmatprep.mubr.f32.mxu0 %v2151_v0 }
 0x495   :  { %v142_v58 = vpop.trf.xlu0 }
 0x496   :  { %747 = vadd.xlane.f32.xlu1 %v746_v50  ;;  %1692 = vmatmul.mubr.msk.f32.gmra.mxu0 %vm223_vm0, %v142_v58 }
 0x497   :  { %972 = vmatprep.mubr.f32.mxu0 %v2151_v0 }
 0x4c9   :  { %162 = vxpose.xlu1.b32.start [1/4] (short) (narrow) %v1674_v59, 16  ;;  %v2389_v59 = vld [vmem:[#allocation4 + $0x140] sm:$0xff] }
 0x4cd   :  { %163 = vxpose.xlu1.b32.cont [2/4] (short) (narrow) %v1675_v60, 16 }
 0x4d1   :  { %164 = vxpose.xlu1.b32.cont [3/4] (short) (narrow) %v1676_v61, 16  ;;  %v2393_v61 = vld [vmem:[#allocation4 + $0x138] sm:$0xff] }
 0x4d5   :  { %165 = vxpose.xlu1.b32.end [4/4] (short) (narrow) %v1677_v62, 16 }
 0x51b   :  { %v751_v63 = vpop.xlane.xlu1 %750 }
 0x51c   :  { %v754_v1 = vmul.f32 0.03125, %v751_v63 }
 0x51e   :  { %v756_v2 = vsub.f32 %v743_v47, %v754_v1  ;;  %v2357_v47 = vld [vmem:[#allocation4 + $0x158] sm:$0xff]  ;;  %v2399_v1 = vld [vmem:[#allocation4 + $0x130] sm:$0xff] }
 0x51f   :  { %v748_v3 = vpop.xlane.xlu1 %747 }
 0x520   :  { %v753_v4 = vmul.f32 0.03125, %v748_v3  ;;  %v758_v5 = vmul.f32 %v756_v2, %v756_v2  ;;  %v2403_v3 = vld [vmem:[#allocation4 + $0x128] sm:$0xff] }
 0x522   :  { %v755_v6 = vsub.f32 %v742_v49, %v753_v4  ;;  %v762_v7 = vsel %vm223_vm0, %v758_v5, 0.0 }
 0x523   :  { %763 = vadd.xlane.f32.xlu1 %v762_v7 }
 0x524   :  { %v757_v8 = vmul.f32 %v755_v6, %v755_v6 }
 0x526   :  { %v759_v9 = vsel %vm223_vm0, %v757_v8, 0.0  ;;  %v2413_v8 = vld [vmem:[#allocation4 + $0x118] sm:$0xff] }
 0x527   :  { %760 = vadd.xlane.f32.xlu0 %v759_v9 }
 0x545   :  { %v178_v14 = vpop.trf.xlu1 }
 0x546   :  { %1693 = vmatmul.mubr.msk.f32.gmra.mxu0 %vm223_vm0, %v178_v14  ;;  %v2425_v14 = vld [vmem:[#allocation4 + $0x100] sm:$0xff] }
 0x547   :  { %978 = vmatprep.mubr.f32.mxu0 %v2151_v0 }
 0x549   :  { %v179_v15 = vpop.trf.xlu1 }
 0x54a   :  { %1694 = vmatmul.mubr.msk.f32.gmra.mxu0 %vm223_vm0, %v179_v15 }
 0x552   :  { %v962_v36 = vpop.f32.mrf.mxu0 }
 0x553   :  { %v2383_v22 = vadd.f32 %v962_v36, %v877_v42 }
 0x554   :  { %v964_v37 = vpop.f32.mrf.mxu0 }
 0x555   :  { %v2377_v55 = vadd.f32 %v964_v37, %v881_v44  ;;  %v1020_v62 = vmul.f32 %v2389_v59, %v2383_v22  ;;  %v1012_v36 = vmul.f32 %v2425_v14, %v2383_v22 }
 0x556   :  { %v968_v38 = vpop.f32.mrf.mxu0 }
 0x557   :  { %v2365_v51 = vadd.f32 %v968_v38, %v877_v42  ;;  %v1036_v60 = vmul.f32 %v2389_v59, %v2377_v55 }
 0x558   :  { %v970_v39 = vpop.f32.mrf.mxu0 }
 0x559   :  { %v2367_v53 = vadd.f32 %v970_v39, %v881_v44  ;;  %v1021_v21 = vmul.f32 %v2375_v54, %v2365_v51  ;;  %v1017_v15 = vmul.f32 %v2403_v3, %v2365_v51 }
 0x55b   :  { %v1037_v58 = vmul.f32 %v2375_v54, %v2367_v53  ;;  %v1033_v5 = vmul.f32 %v2403_v3, %v2367_v53 }
 0x5ac   :  { %v764_v16 = vpop.xlane.xlu1 %763 }
 0x5ad   :  { %v766_v17 = vmul.f32 0.03125, %v764_v16  ;;  %v1029_v16 = vmul.f32 %v2423_v13, %v2367_v53 }
 0x5af   :  { %v768_v18 = vadd.f32 1e-05, %v766_v17  ;;  %v2431_v17 = vld [vmem:[#allocation4 + $0xf8] sm:$0xff] }
 0x5b0   :  { %v761_v19 = vpop.xlane.xlu0 %760 }
 0x5b1   :  { %2081 = vrsqrt.f32 %v768_v18  ;;  %v765_v20 = vmul.f32 0.03125, %v761_v19  ;;  %v1028_v18 = vmul.f32 %v2425_v14, %v2377_v55  ;;  %v2435_v19 = vld [vmem:[#allocation4 + $0xf0] sm:$0xff] }
 0x5b3   :  { %v767_v23 = vadd.f32 1e-05, %v765_v20 }
 0x5b5   :  { %2083 = vrsqrt.f32 %v767_v23 }
 0x5be   :  { %v2082_v26 = vpop.eup %2081 }
 0x5bf   :  { %v772_v27 = vmul.f32 %v2082_v26, %v756_v2  ;;  %v2441_v26 = vld [vmem:[#allocation4 + $0xe8] sm:$0xff] }
 0x5c0   :  { %v1009_v39 = vmul.f32 %v2441_v26, %v2365_v51 }
 0x5c1   :  { %v774_v0 = vmul.f32 %v772_v27, %v744_v28 }
 0x5c2   :  { %v2084_v29 = vpop.eup %2083 }
 0x5c3   :  { %v771_v31 = vmul.f32 %v2084_v29, %v755_v6  ;;  %v2342_v35 = vadd.f32 %v774_v0, %v745_v32  ;;  %v2409_v6 = vld [vmem:[#allocation4 + $0x120] sm:$0xff] }
 0x5c4   :  { %v1032_v7 = vmul.f32 %v2409_v6, %v2377_v55  ;;  %v1016_v20 = vmul.f32 %v2409_v6, %v2383_v22 }
 0x5c5   :  { %v773_v33 = vmul.f32 %v771_v31, %v744_v28  ;;  %v2445_v28 = vld [vmem:[#allocation4 + $0xe0] sm:$0xff]  ;;  %v1025_v31 = vmul.f32 %v2441_v26, %v2367_v53 }
 0x5c6   :  { %v1024_v0 = vmul.f32 %v2445_v28, %v2377_v55  ;;  %v1008_v40 = vmul.f32 %v2445_v28, %v2383_v22 }
 0x5c7   :  { %v2340_v34 = vadd.f32 %v773_v33, %v745_v32  ;;  %v1013_v33 = vmul.f32 %v2423_v13, %v2365_v51 }
 0x5c9   :  { %1916 = vmatprep.mubr.msk.f32.mxu1 %vm223_vm0, %v2340_v34 }
 0x5ca   :  { %1917 = vmatmul.mubr.msk.f32.vlgmr.msra.gmra.mxu1 %vm223_vm0, %v2342_v35 }
 0x606   :  { %v974_v41 = vpop.f32.mrf.mxu0 }
 0x607   :  { %v2355_v45 = vadd.f32 %v974_v41, %v877_v42 }
 0x608   :  { %v976_v43 = vpop.f32.mrf.mxu0 }
 0x609   :  { %v2361_v49 = vadd.f32 %v976_v43, %v881_v44  ;;  %v1022_v25 = vmul.f32 %v2359_v48, %v2355_v45  ;;  %v1018_v9 = vmul.f32 %v2399_v1, %v2355_v45  ;;  %v1014_v32 = vmul.f32 %v2419_v11, %v2355_v45 }
 0x60a   :  { %v980_v46 = vpop.f32.mrf.mxu0  ;;  %v1010_v38 = vmul.f32 %v2435_v19, %v2355_v45 }
 0x60b   :  { %v2363_v50 = vadd.f32 %v980_v46, %v877_v42  ;;  %v1038_v57 = vmul.f32 %v2359_v48, %v2361_v49  ;;  %v1034_v2 = vmul.f32 %v2399_v1, %v2361_v49  ;;  %v1030_v12 = vmul.f32 %v2419_v11, %v2361_v49  ;;  %v781_v42 = vld [vmem:[%s2575_s4 + $0x2] ss:$0 sm:$0xff]  ;;  %v1002_v46 = vld [vmem:[#allocation4 + $0x178] sm:$0xff] }
 0x60c   :  { %v982_v52 = vpop.f32.mrf.mxu0  ;;  %v1026_v27 = vmul.f32 %v2435_v19, %v2361_v49 }
 0x60d   :  { %v1023_v24 = vmul.f32 %v2357_v47, %v2363_v50  ;;  %v2373_v30 = vadd.f32 %v982_v52, %v881_v44  ;;  %v1019_v4 = vmul.f32 %v2393_v61, %v2363_v50  ;;  %v1015_v29 = vmul.f32 %v2413_v8, %v2363_v50 }
 0x60e   :  { %v1011_v37 = vmul.f32 %v2431_v17, %v2363_v50  ;;  %v1001_v50 = vld [vmem:[#allocation4 + $0x170] sm:$0xff] }
 0x60f   :  { %1919 = vmatprep.subr.mxu1 %v1023_v24  ;;  %v1039_v56 = vmul.f32 %v2357_v47, %v2373_v30  ;;  %v1035_v63 = vmul.f32 %v2393_v61, %v2373_v30  ;;  %v1031_v10 = vmul.f32 %v2413_v8, %v2373_v30  ;;  %v1027_v23 = vmul.f32 %v2431_v17, %v2373_v30 }
 0x610   :  { %1920 = vmatpush3.xpose.msra.mxu1 %v1023_v24 }
 0x611   :  { %1921 = vmatprep.subr.mxu1 %v1022_v25  ;;  %1954 = vmatprep.subr.mxu0 %v1039_v56 }
 0x612   :  { %1955 = vmatpush3.msra.mxu0 %v1039_v56 }
 0x613   :  { %1956 = vmatprep.subr.mxu0 %v1038_v57 }
 0x614   :  { %1922 = vmatpush3.xpose.msra.mxu1 %v1022_v25  ;;  %1957 = vmatpush3.msra.mxu0 %v1038_v57 }
 0x615   :  { %1923 = vmatprep.subr.mxu1 %v1021_v21  ;;  %1958 = vmatprep.subr.mxu0 %v1037_v58 }
 0x616   :  { %1959 = vmatpush3.msra.mxu0 %v1037_v58  ;;  %v1003_v58 = vld [vmem:[#allocation4 + $0x20] sm:$0xff] }
 0x617   :  { %1960 = vmatprep.subr.mxu0 %v1036_v60 }
 0x618   :  { %1924 = vmatpush3.xpose.msra.mxu1 %v1021_v21  ;;  %1961 = vmatpush3.msra.mxu0 %v1036_v60 }
 0x619   :  { %1925 = vmatprep.subr.mxu1 %v1020_v62  ;;  %1962 = vmatprep.subr.mxu0 %v1035_v63 }
 0x61a   :  { %1963 = vmatpush3.msra.mxu0 %v1035_v63 }
 0x61b   :  { %1964 = vmatprep.subr.mxu0 %v1034_v2 }
 0x61c   :  { %1926 = vmatpush3.xpose.msra.mxu1 %v1020_v62  ;;  %1965 = vmatpush3.msra.mxu0 %v1034_v2 }
 0x61d   :  { %1927 = vmatprep.subr.mxu1 %v1019_v4  ;;  %1966 = vmatprep.subr.mxu0 %v1033_v5 }
 0x61e   :  { %1967 = vmatpush3.msra.mxu0 %v1033_v5 }
 0x61f   :  { %1968 = vmatprep.subr.mxu0 %v1032_v7 }
 0x620   :  { %1928 = vmatpush3.xpose.msra.mxu1 %v1019_v4  ;;  %1969 = vmatpush3.msra.mxu0 %v1032_v7  ;;  %v1007_v4 = vld [vmem:[%s2575_s4 + $0x4] ss:$0 sm:$0xff] }
 0x621   :  { %1929 = vmatprep.subr.mxu1 %v1018_v9  ;;  %1970 = vmatprep.subr.mxu0 %v1031_v10 }
 0x622   :  { %1971 = vmatpush3.msra.mxu0 %v1031_v10 }
 0x623   :  { %1972 = vmatprep.subr.mxu0 %v1030_v12 }
 0x624   :  { %1930 = vmatpush3.xpose.msra.mxu1 %v1018_v9  ;;  %1973 = vmatpush3.msra.mxu0 %v1030_v12 }
 0x625   :  { %1931 = vmatprep.subr.mxu1 %v1017_v15  ;;  %1974 = vmatprep.subr.mxu0 %v1029_v16 }
 0x626   :  { %1975 = vmatpush3.msra.mxu0 %v1029_v16 }
 0x627   :  { %1976 = vmatprep.subr.mxu0 %v1028_v18 }
 0x628   :  { %1932 = vmatpush3.xpose.msra.mxu1 %v1017_v15  ;;  %1977 = vmatpush3.msra.mxu0 %v1028_v18 }
 0x629   :  { %1933 = vmatprep.subr.mxu1 %v1016_v20  ;;  %1978 = vmatprep.subr.mxu0 %v1027_v23 }
 0x62a   :  { %1979 = vmatpush3.msra.mxu0 %v1027_v23 }
 0x62b   :  { %1980 = vmatprep.subr.mxu0 %v1026_v27 }
 0x62c   :  { %1934 = vmatpush3.xpose.msra.mxu1 %v1016_v20  ;;  %1981 = vmatpush3.msra.mxu0 %v1026_v27  ;;  %v1395_v27 = vld [vmem:[#allocation4 + $0x48] sm:$0xff] }
 0x62d   :  { %1935 = vmatprep.subr.mxu1 %v1015_v29  ;;  %1982 = vmatprep.subr.mxu0 %v1025_v31 }
 0x62e   :  { %1983 = vmatpush3.msra.mxu0 %v1025_v31  ;;  %v1488_v31 = vld [vmem:[#allocation4 + $0x90] sm:$0xff] }
 0x62f   :  { %1984 = vmatprep.subr.mxu0 %v1024_v0 }
 0x630   :  { %1936 = vmatpush3.xpose.msra.mxu1 %v1015_v29  ;;  %1985 = vmatpush3.msra.mxu0 %v1024_v0  ;;  %v1489_v29 = vld [vmem:[#allocation4 + $0x98] sm:$0xff]  ;;  %v1487_v0 = vld [vmem:[#allocation4 + $0x88] sm:$0xff] }
 0x631   :  { %1937 = vmatprep.subr.mxu1 %v1014_v32  ;;  %1989 = vmatprep.subr.mxu0 %v2357_v47 }
 0x634   :  { %1938 = vmatpush3.xpose.msra.mxu1 %v1014_v32  ;;  %v1486_v32 = vld [vmem:[#allocation4 + $0x80] sm:$0xff] }
 0x635   :  { %1939 = vmatprep.subr.mxu1 %v1013_v33 }
 0x638   :  { %1940 = vmatpush3.xpose.msra.mxu1 %v1013_v33 }
 0x639   :  { %1941 = vmatprep.subr.mxu1 %v1012_v36 }
 0x63c   :  { %1942 = vmatpush3.xpose.msra.mxu1 %v1012_v36 }
 0x63d   :  { %1943 = vmatprep.subr.mxu1 %v1011_v37 }
 0x640   :  { %1944 = vmatpush3.xpose.msra.mxu1 %v1011_v37 }
 0x641   :  { %1945 = vmatprep.subr.mxu1 %v1010_v38 }
 0x644   :  { %1946 = vmatpush3.xpose.msra.mxu1 %v1010_v38 }
 0x645   :  { %1947 = vmatprep.subr.mxu1 %v1009_v39 }
 0x648   :  { %1948 = vmatpush3.xpose.msra.mxu1 %v1009_v39 }
 0x649   :  { %1949 = vmatprep.subr.mxu1 %v1008_v40 }
 0x64c   :  { %1950 = vmatpush3.xpose.msra.mxu1 %v1008_v40 }
 0x68a   :  { %v1918_v41 = vpop.f32.mrf.mxu1 }
 0x68b   :  { %v860_v45 = vadd.f32 %v1918_v41, %v781_v42 }
 0x68c   :  { %v854_v43 = vpop.f32.mrf.mxu1 }
 0x68d   :  { %v855_v44 = vadd.f32 %v854_v43, %v781_v42  ;;  %v1362_v42 = vld [vmem:[%s2575_s4 + $0x19] ss:$0 sm:$0xff] }
 0x68f   :  { %1951 = vmatprep.mubr.f32.mxu1 %v855_v44 }
 0x690   :  { %1952 = vmatmul.mubr.f32.vlgmr.msra.gmra.mxu1 %v860_v45 }
 0x750   :  { %v1953_v49 = vpop.f32.mrf.mxu1 }
 0x751   :  { %v1112_v51 = vadd.f32 %v1953_v49, %v1002_v46  ;;  %v1363_v49 = vld [vmem:[%s2575_s4 + $0x1a] ss:$0 sm:$0xff] }
 0x752   :  { %v1106_v52 = vpop.f32.mrf.mxu1 }
 0x753   :  { %v1107_v53 = vadd.f32 %v1106_v52, %v1001_v50  ;;  %1117 = vmax.xlane.f32.xlu1 %v1112_v51 }
 0x755   :  { %1115 = vmax.xlane.f32.xlu0 %v1107_v53 }
 0x7dc   :  { %v1118_v24 = vpop.xlane.xlu1 %1117 }
 0x7dd   :  { %v1120_v25 = vsub.f32 %v1112_v51, %v1118_v24  ;;  %v1484_v24 = vld [vmem:[#allocation4 + $0x70] sm:$0xff] }
 0x7de   :  { %v1116_v30 = vpop.xlane.xlu0 %1115 }
 0x7df   :  { %v1119_v55 = vsub.f32 %v1107_v53, %v1116_v30  ;;  %v1123_v56 = vmul.f32 1.442695, %v1120_v25  ;;  %v1485_v53 = vld [vmem:[#allocation4 + $0x78] sm:$0xff]  ;;  %v1483_v25 = vld [vmem:[#allocation4 + $0x68] sm:$0xff]  ;;  %v1482_v30 = vld [vmem:[#allocation4 + $0x60] sm:$0xff] }
 0x7e1   :  { %v1121_v57 = vmul.f32 1.442695, %v1119_v55  ;;  %v1398_v55 = vld [vmem:[%s2575_s4 + $0x5] ss:$0 sm:$0xff] }
 0x7e3   :  { %2085 = vpow2.f32 %v1121_v57 }
 0x7e4   :  { %2087 = vpow2.f32 %v1123_v56 }
 0x7f0   :  { %v2086_v22 = vpop.eup %2085 }
 0x7f1   :  { %v2088_v21 = vpop.eup %2087  ;;  %1986 = vmatprep.mubr.f32.mxu0 %v2086_v22 }
 0x7f2   :  { %1987 = vmatmul.mubr.f32.vlgmr.msra.gmra.mxu0 %v2088_v21 }
 0x7f3   :  { %1990 = vmatpush3.msra.mxu0 %v2357_v47  ;;  %2021 = vmatprep.mubr.f32.mxu0 %v2086_v22  ;;  %v1006_v47 = vld [vmem:[#allocation4 + $0x38] sm:$0xff] }
 0x7f4   :  { %1991 = vmatprep.subr.mxu0 %v2359_v48  ;;  %2024 = vmatprep.subr.mxu1 %v1006_v47 }
 0x7f5   :  { %1992 = vmatpush3.msra.mxu0 %v2359_v48  ;;  %v1005_v48 = vld [vmem:[#allocation4 + $0x30] sm:$0xff]  ;;  %2025 = vmatpush3.msra.mxu1 %v1006_v47 }
 0x7f6   :  { %1993 = vmatprep.subr.mxu0 %v2375_v54  ;;  %2026 = vmatprep.subr.mxu1 %v1005_v48 }
 0x7f7   :  { %1994 = vmatpush3.msra.mxu0 %v2375_v54  ;;  %v1004_v54 = vld [vmem:[#allocation4 + $0x28] sm:$0xff]  ;;  %2027 = vmatpush3.msra.mxu1 %v1005_v48 }
 0x7f8   :  { %1995 = vmatprep.subr.mxu0 %v2389_v59  ;;  %2028 = vmatprep.subr.mxu1 %v1004_v54 }
 0x7f9   :  { %1996 = vmatpush3.msra.mxu0 %v2389_v59  ;;  %2029 = vmatpush3.msra.mxu1 %v1004_v54  ;;  %v1490_v54 = vld [vmem:[%s2575_s4 + $0x6] ss:$0 sm:$0xff] }
 0x7fa   :  { %1997 = vmatprep.subr.mxu0 %v2393_v61  ;;  %2030 = vmatprep.subr.mxu1 %v1003_v58 }
 0x7fb   :  { %1998 = vmatpush3.msra.mxu0 %v2393_v61  ;;  %2031 = vmatpush3.msra.mxu1 %v1003_v58 }
 0x7fc   :  { %1999 = vmatprep.subr.mxu0 %v2399_v1  ;;  %2046 = vmatprep.subr.mxu1 %v1489_v29 }
 0x7fd   :  { %2000 = vmatpush3.msra.mxu0 %v2399_v1 }
 0x7fe   :  { %2001 = vmatprep.subr.mxu0 %v2403_v3 }
 0x7ff   :  { %2002 = vmatpush3.msra.mxu0 %v2403_v3 }
 0x800   :  { %2003 = vmatprep.subr.mxu0 %v2409_v6 }
 0x801   :  { %2004 = vmatpush3.msra.mxu0 %v2409_v6 }
 0x802   :  { %2005 = vmatprep.subr.mxu0 %v2413_v8 }
 0x803   :  { %2006 = vmatpush3.msra.mxu0 %v2413_v8 }
 0x804   :  { %2007 = vmatprep.subr.mxu0 %v2419_v11 }
 0x805   :  { %2008 = vmatpush3.msra.mxu0 %v2419_v11 }
 0x806   :  { %2009 = vmatprep.subr.mxu0 %v2423_v13 }
 0x807   :  { %2010 = vmatpush3.msra.mxu0 %v2423_v13 }
 0x808   :  { %2011 = vmatprep.subr.mxu0 %v2425_v14 }
 0x809   :  { %2012 = vmatpush3.msra.mxu0 %v2425_v14 }
 0x80a   :  { %2013 = vmatprep.subr.mxu0 %v2431_v17 }
 0x80b   :  { %2014 = vmatpush3.msra.mxu0 %v2431_v17 }
 0x80c   :  { %2015 = vmatprep.subr.mxu0 %v2435_v19 }
 0x80d   :  { %2016 = vmatpush3.msra.mxu0 %v2435_v19 }
 0x80e   :  { %2017 = vmatprep.subr.mxu0 %v2441_v26 }
 0x80f   :  { %2018 = vmatpush3.msra.mxu0 %v2441_v26  ;;  %v1397_v26 = vld [vmem:[#allocation4 + $0x58] sm:$0xff] }
 0x810   :  { %2019 = vmatprep.subr.mxu0 %v2445_v28 }
 0x811   :  { %2020 = vmatpush3.msra.mxu0 %v2445_v28  ;;  %v1394_v28 = vld [vmem:[#allocation4 + $0x40] sm:$0xff] }
 0x812   :  { %2022 = vmatmul.mubr.f32.vlgmr.msra.gmra.mxu0 %v2088_v21  ;;  %2035 = vmatprep.subr.mxu0 %v1397_v26 }
 0x813   :  { %2036 = vmatpush3.msra.mxu0 %v1397_v26  ;;  %v1574_v26 = vld [vmem:[%s2575_s4 + $0x1b] ss:$0 sm:$0xff] }
 0x8b2   :  { %v1988_v59 = vpop.f32.mrf.mxu0 }
 0x8b4   :  { %v1191_v60 = vpop.f32.mrf.mxu0 }
 0x8d2   :  { %v2023_v61 = vpop.f32.mrf.mxu0 }
 0x8d3   :  { %2089 = vrcp.f32 %v2023_v61 }
 0x8d4   :  { %v1266_v62 = vpop.f32.mrf.mxu0 }
 0x8d5   :  { %2091 = vrcp.f32 %v1266_v62 }
 0x8e0   :  { %v2090_v63 = vpop.eup %2089 }
 0x8e1   :  { %v1278_v3 = vmul.f32 %v2090_v63, %v1988_v59 }
 0x8e2   :  { %v2092_v1 = vpop.eup %2091 }
 0x8e3   :  { %v1277_v2 = vmul.f32 %v2092_v1, %v1191_v60 }
 0x8e5   :  { %2032 = vmatprep.mubr.msk.f32.mxu1 %vm223_vm0, %v1277_v2 }
 0x8e6   :  { %2033 = vmatmul.mubr.msk.f32.vlgmr.msra.gmra.mxu1 %vm223_vm0, %v1278_v3 }
 0x8e7   :  { %2047 = vmatpush3.msra.mxu1 %v1489_v29 }
 0x8e8   :  { %2048 = vmatprep.subr.mxu1 %v1488_v31 }
 0x8e9   :  { %2049 = vmatpush3.msra.mxu1 %v1488_v31 }
 0x8ea   :  { %2050 = vmatprep.subr.mxu1 %v1487_v0 }
 0x8eb   :  { %2051 = vmatpush3.msra.mxu1 %v1487_v0 }
 0x8ec   :  { %2052 = vmatprep.subr.mxu1 %v1486_v32 }
 0x8ed   :  { %2053 = vmatpush3.msra.mxu1 %v1486_v32 }
 0x8ee   :  { %2054 = vmatprep.subr.mxu1 %v1485_v53 }
 0x8ef   :  { %2055 = vmatpush3.msra.mxu1 %v1485_v53 }
 0x8f0   :  { %2056 = vmatprep.subr.mxu1 %v1484_v24 }
 0x8f1   :  { %2057 = vmatpush3.msra.mxu1 %v1484_v24 }
 0x8f2   :  { %2058 = vmatprep.subr.mxu1 %v1483_v25 }
 0x8f3   :  { %2059 = vmatpush3.msra.mxu1 %v1483_v25 }
 0x8f4   :  { %2060 = vmatprep.subr.mxu1 %v1482_v30 }
 0x8f5   :  { %2061 = vmatpush3.msra.mxu1 %v1482_v30 }
 0x9a6   :  { %v2034_v5 = vpop.f32.mrf.mxu1 }
 0x9a7   :  { %v1357_v6 = vadd.f32 %v2034_v5, %v1007_v4 }
 0x9a8   :  { %v1351_v7 = vpop.f32.mrf.mxu1 }
 0x9a9   :  { %v1352_v8 = vadd.f32 %v1351_v7, %v1007_v4  ;;  %v1361_v9 = vadd.f32 %v1357_v6, %v2342_v35 }
 0x9ab   :  { %v1367_v10 = vsel %vm223_vm0, %v1361_v9, 0.0  ;;  %v1360_v11 = vadd.f32 %v1352_v8, %v2340_v34  ;;  %v1396_v34 = vld [vmem:[#allocation4 + $0x50] sm:$0xff] }
 0x9ac   :  { %1368 = vadd.xlane.f32.xlu1 %v1367_v10  ;;  %2037 = vmatprep.subr.mxu0 %v1396_v34 }
 0x9ad   :  { %v1364_v12 = vsel %vm223_vm0, %v1360_v11, 0.0  ;;  %2038 = vmatpush3.msra.mxu0 %v1396_v34 }
 0x9ae   :  { %1365 = vadd.xlane.f32.xlu0 %v1364_v12  ;;  %2039 = vmatprep.subr.mxu0 %v1395_v27 }
 0x9af   :  { %2040 = vmatpush3.msra.mxu0 %v1395_v27  ;;  %v1575_v27 = vld [vmem:[%s2575_s4 + $0x1c] ss:$0 sm:$0xff] }
 0x9b0   :  { %2041 = vmatprep.subr.mxu0 %v1394_v28 }
 0x9b1   :  { %2042 = vmatpush3.msra.mxu0 %v1394_v28 }
 0xa35   :  { %v1369_v13 = vpop.xlane.xlu1 %1368 }
 0xa36   :  { %v1371_v14 = vmul.f32 0.03125, %v1369_v13 }
 0xa37   :  { %v1366_v15 = vpop.xlane.xlu0 %1365 }
 0xa38   :  { %v1373_v16 = vsub.f32 %v1361_v9, %v1371_v14  ;;  %v1370_v17 = vmul.f32 0.03125, %v1366_v15 }
 0xa3a   :  { %v1372_v18 = vsub.f32 %v1360_v11, %v1370_v17  ;;  %v1375_v19 = vmul.f32 %v1373_v16, %v1373_v16 }
 0xa3c   :  { %v1379_v20 = vsel %vm223_vm0, %v1375_v19, 0.0  ;;  %v1374_v23 = vmul.f32 %v1372_v18, %v1372_v18 }
 0xa3d   :  { %1380 = vadd.xlane.f32.xlu1 %v1379_v20 }
 0xa3e   :  { %v1376_v35 = vsel %vm223_vm0, %v1374_v23, 0.0 }
 0xa3f   :  { %1377 = vadd.xlane.f32.xlu0 %v1376_v35 }
 0xac6   :  { %v1381_v33 = vpop.xlane.xlu1 %1380 }
 0xac7   :  { %v1383_v36 = vmul.f32 0.03125, %v1381_v33 }
 0xac8   :  { %v1378_v37 = vpop.xlane.xlu0 %1377 }
 0xac9   :  { %v1385_v38 = vadd.f32 1e-05, %v1383_v36  ;;  %v1382_v39 = vmul.f32 0.03125, %v1378_v37 }
 0xacb   :  { %2093 = vrsqrt.f32 %v1385_v38  ;;  %v1384_v40 = vadd.f32 1e-05, %v1382_v39 }
 0xacd   :  { %2095 = vrsqrt.f32 %v1384_v40 }
 0xad8   :  { %v2094_v41 = vpop.eup %2093 }
 0xad9   :  { %v1389_v43 = vmul.f32 %v2094_v41, %v1373_v16 }
 0xada   :  { %v2096_v44 = vpop.eup %2095 }
 0xadb   :  { %v1388_v45 = vmul.f32 %v2096_v44, %v1372_v18  ;;  %v1391_v46 = vmul.f32 %v1389_v43, %v1362_v42 }
 0xadd   :  { %v1390_v50 = vmul.f32 %v1388_v45, %v1362_v42  ;;  %v1393_v52 = vadd.f32 %v1391_v46, %v1363_v49 }
 0xadf   :  { %v1392_v51 = vadd.f32 %v1390_v50, %v1363_v49 }
 0xae1   :  { %2043 = vmatprep.mubr.msk.f32.mxu0 %vm223_vm0, %v1392_v51 }
 0xae2   :  { %2044 = vmatmul.mubr.msk.f32.vlgmr.msra.gmra.mxu0 %vm223_vm0, %v1393_v52 }
 0xba2   :  { %v2045_v56 = vpop.f32.mrf.mxu0 }
 0xba3   :  { %v1477_v57 = vadd.f32 %v2045_v56, %v1398_v55 }
 0xba4   :  { %v1471_v22 = vpop.f32.mrf.mxu0 }
 0xba5   :  { %v1472_v21 = vadd.f32 %v1471_v22, %v1398_v55  ;;  %v1481_v48 = vmax.f32 %v1477_v57, 0.0 }
 0xba7   :  { %v1480_v47 = vmax.f32 %v1472_v21, 0.0 }
 0xba9   :  { %2062 = vmatprep.mubr.msk.f32.mxu1 %vm488_vm1, %v1480_v47 }
 0xbaa   :  { %2063 = vmatmul.mubr.msk.f32.vlgmr.msra.gmra.mxu1 %vm488_vm1, %v1481_v48 }
 0xc6a   :  { %v2064_v58 = vpop.f32.mrf.mxu1 }
 0xc6b   :  { %v1569_v59 = vadd.f32 %v2064_v58, %v1490_v54 }
 0xc6c   :  { %v1563_v60 = vpop.f32.mrf.mxu1 }
 0xc6d   :  { %v1564_v61 = vadd.f32 %v1563_v60, %v1490_v54  ;;  %v1573_v62 = vadd.f32 %v1569_v59, %v1393_v52 }
 0xc6f   :  { %v1579_v63 = vsel %vm223_vm0, %v1573_v62, 0.0  ;;  %v1572_v1 = vadd.f32 %v1564_v61, %v1392_v51 }
 0xc70   :  { %1580 = vadd.xlane.f32.xlu1 %v1579_v63 }
 0xc71   :  { %v1576_v2 = vsel %vm223_vm0, %v1572_v1, 0.0 }
 0xc72   :  { %1577 = vadd.xlane.f32.xlu0 %v1576_v2 }
 0xcf9   :  { %v1581_v3 = vpop.xlane.xlu1 %1580 }
 0xcfa   :  { %v1583_v4 = vmul.f32 0.03125, %v1581_v3 }
 0xcfb   :  { %v1578_v5 = vpop.xlane.xlu0 %1577 }
 0xcfc   :  { %v1585_v6 = vsub.f32 %v1573_v62, %v1583_v4  ;;  %v1582_v7 = vmul.f32 0.03125, %v1578_v5 }
 0xcfe   :  { %v1584_v8 = vsub.f32 %v1572_v1, %v1582_v7  ;;  %v1587_v9 = vmul.f32 %v1585_v6, %v1585_v6 }
 0xd00   :  { %v1591_v10 = vsel %vm223_vm0, %v1587_v9, 0.0  ;;  %v1586_v11 = vmul.f32 %v1584_v8, %v1584_v8 }
 0xd01   :  { %1592 = vadd.xlane.f32.xlu1 %v1591_v10 }
 0xd02   :  { %v1588_v12 = vsel %vm223_vm0, %v1586_v11, 0.0 }
 0xd03   :  { %1589 = vadd.xlane.f32.xlu0 %v1588_v12 }
 0xd8a   :  { %v1593_v13 = vpop.xlane.xlu1 %1592 }
 0xd8b   :  { %v1595_v14 = vmul.f32 0.03125, %v1593_v13 }
 0xd8c   :  { %v1590_v15 = vpop.xlane.xlu0 %1589 }
 0xd8d   :  { %v1597_v16 = vadd.f32 1e-05, %v1595_v14  ;;  %v1594_v17 = vmul.f32 0.03125, %v1590_v15 }
 0xd8f   :  { %2097 = vrsqrt.f32 %v1597_v16  ;;  %v1596_v18 = vadd.f32 1e-05, %v1594_v17 }
 0xd91   :  { %2099 = vrsqrt.f32 %v1596_v18 }
 0xd9c   :  { %v2098_v19 = vpop.eup %2097 }
 0xd9d   :  { %v1601_v35 = vmul.f32 %v2098_v19, %v1585_v6 }
 0xd9e   :  { %v2100_v20 = vpop.eup %2099 }
 0xd9f   :  { %v1600_v23 = vmul.f32 %v2100_v20, %v1584_v8  ;;  %v1603_v28 = vmul.f32 %v1601_v35, %v1574_v26 }
 0xda1   :  { %v1602_v34 = vmul.f32 %v1600_v23, %v1574_v26  ;;  %v1605_v31 = vadd.f32 %v1603_v28, %v1575_v27 }
 0xda3   :  { %v1604_v29 = vadd.f32 %v1602_v34, %v1575_v27 }
 0xda5   :  { %1606 = vxpose.xlu0.b32.start [1/2] (short) (narrow) %v1604_v29, 32 }
 0xda9   :  { %1607 = vxpose.xlu0.b32.end [2/2] (short) (narrow) %v1605_v31, 32 }
 0xe21   :  { %v1622_v0 = vpop.trf.xlu0 }
 0xe22   :  { %1639 = vst.msk [vmem:[%s2576_s5] sm:$0xff] %vm1638_vm2, %v1622_v0  ;;  %1647 = vrot.lane.b32.xlu1 %v1622_v0, %s2152_s9 }
 0xe25   :  { %v1623_v32 = vpop.trf.xlu0 }
 0xe26   :  { %1640 = vst.msk [vmem:[%s2576_s5 + $0x8] sm:$0xff] %vm1638_vm2, %v1623_v32  ;;  %1649 = vrot.lane.b32.xlu1 %v1623_v32, %s2152_s9 }
 0xe29   :  { %v1624_v33 = vpop.trf.xlu0 }
 0xe2a   :  { %1641 = vst.msk [vmem:[%s2576_s5 + $0x10] sm:$0xff] %vm1638_vm2, %v1624_v33  ;;  %1651 = vrot.lane.b32.xlu1 %v1624_v33, %s2152_s9 }
 0xe2d   :  { %v1625_v36 = vpop.trf.xlu0 }
 0xe2e   :  { %1642 = vst.msk [vmem:[%s2576_s5 + $0x18] sm:$0xff] %vm1638_vm2, %v1625_v36  ;;  %1653 = vrot.lane.b32.xlu1 %v1625_v36, %s2152_s9 }
 0xe94   :  { %v1648_v37 = vpop.permute.xlu1 %1647 }
 0xe95   :  { %1701 = vst.msk [vmem:[%s2576_s5 + $0x20] sm:$0xff] %vm1638_vm2, %v1648_v37 }
 0xe98   :  { %v1650_v38 = vpop.permute.xlu1 %1649 }
 0xe99   :  { %1702 = vst.msk [vmem:[%s2576_s5 + $0x28] sm:$0xff] %vm1638_vm2, %v1650_v38 }
 0xe9c   :  { %v1652_v39 = vpop.permute.xlu1 %1651 }
 0xe9d   :  { %1703 = vst.msk [vmem:[%s2576_s5 + $0x30] sm:$0xff] %vm1638_vm2, %v1652_v39 }
 0xea0   :  { %v1654_v40 = vpop.permute.xlu1 %1653 }
 0xea1   :  { %1704 = vst.msk [vmem:[%s2576_s5 + $0x38] sm:$0xff] %vm1638_vm2, %v1654_v40 }
 0xea2   :  { %1668 = vsyncpa [#allocation3], 1 }
 0xea3   :  { %1669 = vsyncpa [#allocation5], 1 }

</bundles_post_ra>
